<compile_context>
chip_gen: v7x
topology: tpu7x:2x2x1
jax: 0.10.0
libtpu: 0.0.40
codegen_flags: <defaults>
</compile_context>

<pallas_src>
import functools

import jax
import jax.numpy as jnp
from jax.experimental import pallas as pl
from jax.experimental.pallas import tpu as pltpu


# ----------------------------- model config ---------------------------------
OPTIONS = dict(conv_dims=[(4, 8, 4, 2, 1, 1), (8, 16, 4, 2, 1, 1), 8],
               n_domains=2, isBatchNorm=False, isDropout=False)

_DIMS = OPTIONS["conv_dims"][::-1]
CONV_LAYERS = _DIMS[1:]                       # [(8,16,4,2,1,1), (4,8,4,2,1,1)]
IMG_SIZE = 4
LATENT = _DIMS[0]                             # 8
N_DOMAINS = OPTIONS["n_domains"]              # 2
INPUT_DIM = LATENT + N_DOMAINS                # 10


def _convt_out_hw(h, w, k, s, p, d):
    return ((h - 1) * s - 2 * p + d * (k - 1) + 1,
            (w - 1) * s - 2 * p + d * (k - 1) + 1)


def _final_chw():
    h = w = IMG_SIZE
    for (_, _, k, s, p, d) in CONV_LAYERS:
        h, w = _convt_out_hw(h, w, k, s, p, d)
    return CONV_LAYERS[-1][0], h, w


OUT_C, OUT_H, OUT_W = _final_chw()            # (4, 16, 16)


# --------------------------- chip-dependent tiling ---------------------------
def _chip_kind():
    try:
        return jax.devices()[0].device_kind.lower()
    except Exception:
        return ""


def _tb_max():
    kind = _chip_kind()
    if "v5" in kind:
        return 128        # v5e: 4x128^2 MXU, single vst slot -> smallest batch tile
    return 256            # v6e / v7x: 256-wide MXU, bounds f32 spill through vst


def _n_col_split(n_out):
    kind = _chip_kind()
    if ("7" in kind) and (n_out % 256 == 0):
        return 2          # v7x: 2 TensorCores/chip -> split final GEMM columns across them
    return 1


# ----------------------------- Pallas kernel --------------------------------
def _decoder_kernel(*refs, n_tail):
    """refs = (z, w1p, b1p, [m_i, s_i, c_i]*n_tail, out).

    out = sigmoid(leaky(... leaky(leaky(z @ W1' + b1') @ dequant(M1) + c1) ...))
    where W1'/b1' are the Linear folded with the first ConvT's dense operator and
    M_i are int8-stored dense ConvTranspose operators with per-column scale s_i.
    """
    o_ref = refs[-1]
    z_ref, w_ref, b_ref = refs[0], refs[1], refs[2]

    # Folded Linear + first ConvTranspose: bf16 x bf16 -> f32 accumulate on the MXU.
    h = jnp.dot(z_ref[...], w_ref[...], preferred_element_type=jnp.float32) + b_ref[...]
    # LeakyReLU(0.01) of the first conv stage; cast to bf16 eagerly (halves live width).
    h = jnp.maximum(h, 0.01 * h).astype(jnp.bfloat16)

    acc = h  # placeholder (n_tail >= 1 for this config)
    for li in range(n_tail):
        m_ref = refs[3 + 3 * li]
        s_ref = refs[4 + 3 * li]
        c_ref = refs[5 + 3 * li]
        # int8 weights live in VMEM; cast to bf16 on the VPU, accumulate f32 on the MXU,
        # then apply the per-column dequant scale together with the bias add.
        acc = jnp.dot(h, m_ref[...].astype(jnp.bfloat16),
                      preferred_element_type=jnp.float32)
        acc = acc * s_ref[...] + c_ref[...]
        acc = jnp.maximum(acc, 0.01 * acc)          # LeakyReLU(0.01)
        if li < n_tail - 1:
            h = acc.astype(jnp.bfloat16)            # bf16 intermediates between GEMMs

    # Sigmoid: only the negative side can overflow exp(-h); exp + approx reciprocal hit the EUP.
    acc = jnp.maximum(acc, -30.0)
    o_ref[...] = pl.reciprocal(1.0 + jnp.exp(-acc), approx=True).astype(o_ref.dtype)


def cnn_decoder_forward(z, kp):
    """Fused decoder forward: single pallas_call, output reshaped to NCHW."""
    B = z.shape[0]
    n_conv = len(CONV_LAYERS)
    n_tail = n_conv - 1                      # conv layers after the folded first one
    n_out = OUT_C * OUT_H * OUT_W            # 1024
    TB = B if B <= _tb_max() else _tb_max()
    nsplit = _n_col_split(n_out)
    TN = n_out // nsplit

    weights = [kp["w1p"], kp["b1p"]]
    for li in range(1, n_conv):
        weights += [kp[f"m{li}"], kp[f"s{li}"], kp[f"c{li}"]]

    # z is tiled over batch rows; weights are VMEM-resident blocks.  The LAST layer's
    # weight / scale / bias / output are column-split across the second grid axis.
    in_specs = [pl.BlockSpec((TB, INPUT_DIM), lambda i, j: (i, 0)),
                pl.BlockSpec(kp["w1p"].shape, lambda i, j: (0, 0)),
                pl.BlockSpec(kp["b1p"].shape, lambda i, j: (0, 0))]
    for li in range(1, n_conv):
        m, s, c = kp[f"m{li}"], kp[f"s{li}"], kp[f"c{li}"]
        if li == n_conv - 1:
            in_specs += [pl.BlockSpec((m.shape[0], TN), lambda i, j: (0, j)),
                         pl.BlockSpec((1, TN), lambda i, j: (0, j)),
                         pl.BlockSpec((1, TN), lambda i, j: (0, j))]
        else:
            in_specs += [pl.BlockSpec(m.shape, lambda i, j: (0, 0)),
                         pl.BlockSpec(s.shape, lambda i, j: (0, 0)),
                         pl.BlockSpec(c.shape, lambda i, j: (0, 0))]

    out = pl.pallas_call(
        functools.partial(_decoder_kernel, n_tail=n_tail),
        out_shape=jax.ShapeDtypeStruct((B, n_out), jnp.float32),
        grid=(pl.cdiv(B, TB), nsplit),
        in_specs=in_specs,
        out_specs=pl.BlockSpec((TB, TN), lambda i, j: (i, j)),
        compiler_params=pltpu.CompilerParams(
            dimension_semantics=("parallel", "parallel")),
    )(z.astype(jnp.bfloat16), *weights)

    return out.reshape(B, OUT_C, OUT_H, OUT_W)


# -------------------- init-time dense-operator construction ------------------
def conv_transpose_im2col(h_nhwc, k, s, p, d):
    """Zero-dilate + pad so that ConvTranspose2d == patches @ Wmat (+ bias).  NHWC, JAX-side."""
    B, H, W, C = h_nhwc.shape
    pp = d * (k - 1) - p
    assert pp >= 0
    Hd, Wd = (H - 1) * s + 1, (W - 1) * s + 1
    x = jnp.zeros((B, Hd, Wd, C), h_nhwc.dtype).at[:, ::s, ::s, :].set(h_nhwc)
    x = jnp.pad(x, ((0, 0), (pp, pp), (pp, pp), (0, 0)))
    Ho, Wo = _convt_out_hw(H, W, k, s, p, d)
    cols = [x[:, kh * d:kh * d + Ho, kw * d:kw * d + Wo, :]
            for kh in range(k) for kw in range(k)]
    patches = jnp.concatenate(cols, axis=-1).reshape(B * Ho * Wo, k * k * C)
    return patches, (B, Ho, Wo)


def convt_weight_to_gemm(wt):
    """PyTorch ConvTranspose2d weight (Cin, Cout, k, k) -> GEMM matrix (k*k*Cin, Cout)."""
    cin, cout, k, _ = wt.shape
    wf = wt[:, :, ::-1, ::-1]               # spatial flip (transposed conv -> conv)
    wm = jnp.transpose(wf, (2, 3, 0, 1))    # (kh, kw, Cin, Cout)
    return wm.reshape(k * k * cin, cout)


def convt_nchw(x_nchw, wt, s, p, d):
    """Bias-free ConvTranspose2d on NCHW input, PyTorch semantics (JAX-side reference)."""
    B = x_nchw.shape[0]
    k = wt.shape[2]
    hn = jnp.transpose(x_nchw, (0, 2, 3, 1))                       # NHWC
    patches, (Bq, Ho, Wo) = conv_transpose_im2col(hn, k, s, p, d)
    out = patches @ convt_weight_to_gemm(wt)                       # (B*Ho*Wo, Cout)
    return out.reshape(Bq, Ho, Wo, -1).transpose(0, 3, 1, 2)       # back to NCHW


def convt_dense_matrix(wt, hin, win, s, p, d):
    """Dense operator M s.t. NCHW-flat(ConvT(x)) == NCHW-flat(x) @ M  (one-time, init only)."""
    cin = wt.shape[0]
    n_in = cin * hin * win
    eye = jnp.eye(n_in, dtype=jnp.float32).reshape(n_in, cin, hin, win)
    out = convt_nchw(eye, wt, s, p, d)       # (n_in, Cout, Ho, Wo)
    return out.reshape(n_in, -1)


def _quantize_int8_per_col(m):
    """Per-output-column symmetric int8 quantization: m ~= q * scale (scale kept f32)."""
    amax = jnp.max(jnp.abs(m), axis=0)
    scale = jnp.maximum(amax, 1e-12) / 127.0
    q = jnp.clip(jnp.round(m / scale), -127.0, 127.0).astype(jnp.int8)
    return q, scale.reshape(1, -1).astype(jnp.float32)


# ------------------------------- parameters ----------------------------------
def init_raw_params(key):
    ks = jax.random.split(key, 2 + 2 * len(CONV_LAYERS))
    i0 = CONV_LAYERS[0][1]
    raw = {
        "w1": 0.1 * jax.random.normal(ks[0], (INPUT_DIM, i0 * IMG_SIZE * IMG_SIZE), jnp.float32),
        "b1": 0.1 * jax.random.normal(ks[1], (i0 * IMG_SIZE * IMG_SIZE,), jnp.float32),
    }
    for li, (o, i, k, s, p, d) in enumerate(CONV_LAYERS):
        raw[f"wt{li}"] = 0.1 * jax.random.normal(ks[2 + 2 * li], (i, o, k, k), jnp.float32)
        raw[f"bc{li}"] = 0.1 * jax.random.normal(ks[3 + 2 * li], (o,), jnp.float32)
    return raw


def prepare_kernel_params(raw):
    """One-time conversion: fold Linear into ConvT0, int8-quantize the big tail operator."""
    # The fold is only valid when nothing sits between Linear and the first ConvT.
    assert not OPTIONS["isBatchNorm"] and not OPTIONS["isDropout"]

    ms, cs = [], []
    h = w = IMG_SIZE
    for li, (o, i, k, s, p, d) in enumerate(CONV_LAYERS):
        m = convt_dense_matrix(raw[f"wt{li}"], h, w, s, p, d)
        h, w = _convt_out_hw(h, w, k, s, p, d)
        # bias broadcast over H*W in NCHW (channel-major) flat order
        c = jnp.repeat(raw[f"bc{li}"], h * w).reshape(1, -1).astype(jnp.float32)
        ms.append(m)
        cs.append(c)

    # Fold: (z @ w1 + b1) @ M0 + c0  ==  z @ (w1 @ M0) + (b1 @ M0 + c0).  Done in f32.
    w1p = raw["w1"] @ ms[0]                                   # (10, 512)
    b1p = raw["b1"].reshape(1, -1) @ ms[0] + cs[0]            # (1, 512)

    kp = {"w1p": w1p.astype(jnp.bfloat16), "b1p": b1p.astype(jnp.float32)}
    for li in range(1, len(CONV_LAYERS)):
        q, scale = _quantize_int8_per_col(ms[li])             # halves the dominant HBM transfer
        kp[f"m{li}"] = q
        kp[f"s{li}"] = scale
        kp[f"c{li}"] = cs[li]
    return kp


# ------------------------------- reference -----------------------------------
def ref_forward(z, raw):
    """Pure-jnp f32 reference with true conv-transpose math (validates the fused kernel)."""
    B = z.shape[0]
    i0 = CONV_LAYERS[0][1]
    h = z @ raw["w1"] + raw["b1"]
    h = h.reshape(B, i0, IMG_SIZE, IMG_SIZE)                     # NCHW, same as PyTorch .view
    for li, (o, i, k, s, p, d) in enumerate(CONV_LAYERS):
        h = convt_nchw(h, raw[f"wt{li}"], s, p, d) + raw[f"bc{li}"][None, :, None, None]
        h = jnp.where(h >= 0, h, 0.01 * h)                       # LeakyReLU
    return 1.0 / (1.0 + jnp.exp(-h))                             # Sigmoid


# --------------------------------- main ---------------------------------------
if __name__ == "__main__":
    key = jax.random.PRNGKey(0)
    kz, kparams_key = jax.random.split(key)
    z = jax.random.normal(kz, (2, INPUT_DIM), jnp.float32)       # (batch=2, latent+domains=10)

    raw = init_raw_params(kparams_key)
    kparams = prepare_kernel_params(raw)

    forward = jax.jit(cnn_decoder_forward)
    out = jax.block_until_ready(forward(z, kparams))
    ref = jax.block_until_ready(ref_forward(z, raw))

    assert out.shape == (2, 4, 16, 16), out.shape
    assert bool(jnp.all(jnp.isfinite(out)))
    # bf16 MXU inputs + int8 weight quant + approx reciprocal vs f32 reference:
    # accuracy floor ~1e-3 on sigmoid outputs, comfortably within 2e-2.
    err = jnp.max(jnp.abs(out.astype(jnp.float32) - ref))
    assert bool(err < 2e-2), f"mismatch vs jnp reference: {err}"
    print("KERNEL_OK")
</pallas_src>

<mosaic_0001>
module attributes {stable_mosaic.version = 11 : i64} {
  func.func @_decoder_kernel(%arg0: i32, %arg1: i32, %arg2: memref<2x10xbf16, #tpu.memory_space<vmem>>, %arg3: memref<10x512xbf16, #tpu.memory_space<vmem>>, %arg4: memref<1x512xf32, #tpu.memory_space<vmem>>, %arg5: memref<512x1024xi8, #tpu.memory_space<vmem>>, %arg6: memref<1x1024xf32, #tpu.memory_space<vmem>>, %arg7: memref<1x1024xf32, #tpu.memory_space<vmem>>, %arg8: memref<2x1024xf32, #tpu.memory_space<vmem>>) attributes {dimension_semantics = [#tpu.dimension_semantics<parallel>, #tpu.dimension_semantics<parallel>], iteration_bounds = array<i64: 1, 1>, scalar_prefetch = 0 : i64, scratch_operands = 0 : i64, tpu.core_type = #tpu.core_type<tc>, window_params = [{transform_indices = @transform_0, window_bounds = array<i64: 2, 10>}, {pipeline_mode = #tpu.pipeline_mode<synchronous>, transform_indices = @transform_1, window_bounds = array<i64: 10, 512>}, {pipeline_mode = #tpu.pipeline_mode<synchronous>, transform_indices = @transform_2, window_bounds = array<i64: 1, 512>}, {transform_indices = @transform_3, window_bounds = array<i64: 512, 1024>}, {transform_indices = @transform_4, window_bounds = array<i64: 1, 1024>}, {transform_indices = @transform_5, window_bounds = array<i64: 1, 1024>}, {transform_indices = @transform_6, window_bounds = array<i64: 2, 1024>}]} {
    %c0 = arith.constant 0 : index
    %c0_0 = arith.constant 0 : index
    %0 = vector.load %arg2[%c0, %c0_0] : memref<2x10xbf16, #tpu.memory_space<vmem>>, vector<2x10xbf16>
    %c0_1 = arith.constant 0 : index
    %c0_2 = arith.constant 0 : index
    %1 = vector.load %arg3[%c0_1, %c0_2] : memref<10x512xbf16, #tpu.memory_space<vmem>>, vector<10x512xbf16>
    %cst = arith.constant dense<0.000000e+00> : vector<2x512xf32>
    %2 = tpu.matmul %0, %1, %cst {dimension_numbers = #tpu.dot_dimension_numbers<[1], [0], [0], [1], [0, 0, 1, 1], [], []>} : vector<2x10xbf16>, vector<10x512xbf16>, vector<2x512xf32> -> vector<2x512xf32>
    %c0_3 = arith.constant 0 : index
    %c0_4 = arith.constant 0 : index
    %3 = vector.load %arg4[%c0_3, %c0_4] : memref<1x512xf32, #tpu.memory_space<vmem>>, vector<1x512xf32>
    %4 = vector.broadcast %3 : vector<1x512xf32> to vector<2x512xf32>
    %5 = arith.addf %2, %4 : vector<2x512xf32>
    %cst_5 = arith.constant 0.00999999977 : f32
    %6 = vector.broadcast %cst_5 : f32 to vector<2x512xf32>
    %7 = arith.mulf %6, %5 : vector<2x512xf32>
    %8 = arith.maximumf %5, %7 : vector<2x512xf32>
    %9 = arith.truncf %8 : vector<2x512xf32> to vector<2x512xbf16>
    %c0_6 = arith.constant 0 : index
    %c0_7 = arith.constant 0 : index
    %10 = vector.load %arg5[%c0_6, %c0_7] : memref<512x1024xi8, #tpu.memory_space<vmem>>, vector<512x1024xi8>
    %11 = arith.sitofp %10 : vector<512x1024xi8> to vector<512x1024xbf16>
    %cst_8 = arith.constant dense<0.000000e+00> : vector<2x1024xf32>
    %12 = tpu.matmul %9, %11, %cst_8 {dimension_numbers = #tpu.dot_dimension_numbers<[1], [0], [0], [1], [0, 0, 1, 1], [], []>} : vector<2x512xbf16>, vector<512x1024xbf16>, vector<2x1024xf32> -> vector<2x1024xf32>
    %c0_9 = arith.constant 0 : index
    %c0_10 = arith.constant 0 : index
    %13 = vector.load %arg6[%c0_9, %c0_10] : memref<1x1024xf32, #tpu.memory_space<vmem>>, vector<1x1024xf32>
    %14 = vector.broadcast %13 : vector<1x1024xf32> to vector<2x1024xf32>
    %15 = arith.mulf %12, %14 : vector<2x1024xf32>
    %c0_11 = arith.constant 0 : index
    %c0_12 = arith.constant 0 : index
    %16 = vector.load %arg7[%c0_11, %c0_12] : memref<1x1024xf32, #tpu.memory_space<vmem>>, vector<1x1024xf32>
    %17 = vector.broadcast %16 : vector<1x1024xf32> to vector<2x1024xf32>
    %18 = arith.addf %15, %17 : vector<2x1024xf32>
    %cst_13 = arith.constant 0.00999999977 : f32
    %19 = vector.broadcast %cst_13 : f32 to vector<2x1024xf32>
    %20 = arith.mulf %19, %18 : vector<2x1024xf32>
    %21 = arith.maximumf %18, %20 : vector<2x1024xf32>
    %cst_14 = arith.constant -3.000000e+01 : f32
    %22 = vector.broadcast %cst_14 : f32 to vector<2x1024xf32>
    %23 = arith.maximumf %21, %22 : vector<2x1024xf32>
    %cst_15 = arith.constant 0.000000e+00 : f32
    %24 = vector.broadcast %cst_15 : f32 to vector<2x1024xf32>
    %25 = arith.subf %24, %23 : vector<2x1024xf32>
    %26 = math.exp %25 : vector<2x1024xf32>
    %cst_16 = arith.constant 1.000000e+00 : f32
    %27 = vector.broadcast %cst_16 : f32 to vector<2x1024xf32>
    %28 = arith.addf %27, %26 : vector<2x1024xf32>
    %29 = tpu.reciprocal %28 {approx = true} : vector<2x1024xf32> -> vector<2x1024xf32>
    %c0_17 = arith.constant 0 : index
    %c0_18 = arith.constant 0 : index
    %30 = vector.load %arg8[%c0_17, %c0_18] : memref<2x1024xf32, #tpu.memory_space<vmem>>, vector<2x1024xf32>
    tpu.vector_store %arg8[%c0_17, %c0_18], %29 {strides = array<i32>} : memref<2x1024xf32, #tpu.memory_space<vmem>>, vector<2x1024xf32>,
    return
  }
  func.func @transform_0(%arg0: i32, %arg1: i32) -> (i32, i32) {
    %c0_i32 = arith.constant 0 : i32
    %c0_i32_0 = arith.constant 0 : i32
    return %arg0, %c0_i32 : i32, i32
  }
  func.func @transform_1(%arg0: i32, %arg1: i32) -> (i32, i32) {
    %c0_i32 = arith.constant 0 : i32
    %c0_i32_0 = arith.constant 0 : i32
    %c0_i32_1 = arith.constant 0 : i32
    return %c0_i32, %c0_i32_0 : i32, i32
  }
  func.func @transform_2(%arg0: i32, %arg1: i32) -> (i32, i32) {
    %c0_i32 = arith.constant 0 : i32
    %c0_i32_0 = arith.constant 0 : i32
    %c0_i32_1 = arith.constant 0 : i32
    return %c0_i32, %c0_i32_0 : i32, i32
  }
  func.func @transform_3(%arg0: i32, %arg1: i32) -> (i32, i32) {
    %c0_i32 = arith.constant 0 : i32
    %c0_i32_0 = arith.constant 0 : i32
    return %c0_i32, %arg1 : i32, i32
  }
  func.func @transform_4(%arg0: i32, %arg1: i32) -> (i32, i32) {
    %c0_i32 = arith.constant 0 : i32
    %c0_i32_0 = arith.constant 0 : i32
    return %c0_i32, %arg1 : i32, i32
  }
  func.func @transform_5(%arg0: i32, %arg1: i32) -> (i32, i32) {
    %c0_i32 = arith.constant 0 : i32
    %c0_i32_0 = arith.constant 0 : i32
    return %c0_i32, %arg1 : i32, i32
  }
  func.func @transform_6(%arg0: i32, %arg1: i32) -> (i32, i32) {
    %c0_i32 = arith.constant 0 : i32
    return %arg0, %arg1 : i32, i32
  }
}

</mosaic_0001>

<bundles_post_ra>
// kernel: cnn_decoder_forward.1
= control target key start
LH: loop header
LB: loop body
LE: loop exit
PB: predicated region body
PF: predicated region fallthrough
CT: control target
= control target key end

     0   :  { %11 = vsyncpa [#allocation3], 0  ;;  %s1477_s0 = inlined_call_operand.vmem [shape: bf16[2,10], index: 0, kind: input, shape index: {}]   ;;  %s1478_s1 = inlined_call_operand.hbm [shape: bf16[10,512], index: 1, kind: input, shape index: {}]   ;;  %s1479_s2 = inlined_call_operand.vmem [shape: f32[1,512], index: 2, kind: input, shape index: {}]   ;;  %s1480_s3 = inlined_call_operand.hbm [shape: s8[512,1024], index: 3, kind: input, shape index: {}]   ;;  %s1481_s4 = inlined_call_operand.vmem [shape: f32[1,1024], index: 4, kind: input, shape index: {}]   ;;  %s1482_s5 = inlined_call_operand.hbm [shape: f32[1,1024], index: 5, kind: input, shape index: {}]   ;;  %s1483_s6 = inlined_call_operand.vmem [shape: f32[2,1024], index: 6, kind: output, shape index: {}]  }
   0x1   :  { %12 = vsyncpa [#allocation5], 0  ;;  %s1286_s21 = smov [#allocation4]   ;;  %s1216_s25 = scalar_lea.hbm %s1480_s3, 16384 }
   0x2   :  { %s34_s22 = sshll.u32 %s1286_s21, 4  ;;  %p1217_p0 = scmp.ne.s32.totalorder %s1480_s3, %s1216_s25  ;;  %s35_s22 = int_to_ptr.vmem [resolvable:$true] %s34_s22 }
   0x3   :  { %p1220_p1 = scmp.lt.u32.totalorder %s1216_s25, %s1480_s3 }
   0x5   :  { %p1222_p2 = pnand %p1220_p1, %p1217_p0 }
   0x7   :  { %1225 = shalt.err (!%p1222_p2)
}
   0x8   :  { %s1226_s30 = scalar_lea.vmem %s35_s22, 16384  ;;  %p1231_p4 = scmp.lt.s32.totalorder %s35_s22, %s35_s22 }
   0x9   :  { %p1227_p3 = scmp.ne.s32.totalorder %s35_s22, %s1226_s30  ;;  %p1232_p5 = scmp.lt.s32.totalorder %s1226_s30, %s1226_s30 }
   0xb   :  { %p1233_p6 = por %p1232_p5, %p1231_p4 }
   0xd   :  { %p1234_p7 = pnand %p1233_p6, %p1227_p3 }
   0xf   :  { %1237 = shalt.err (!%p1234_p7)
}
  0x10   :  { %s1287_s7 = smov 1024   ;;  %s1288_s8 = smov 64  }
  0x11   :  { %40 = dma.hbm_to_vmem [thread:$0]  %s1480_s3, 16384, %s35_s22, [#allocation5], %s1287_s7, %s1287_s7, %s1288_s8  }
  0x12   :  { %s1289_s11 = smov [#allocation2]   ;;  %s1238_s15 = scalar_lea.hbm %s1478_s1, 512 }
  0x13   :  { %s20_s12 = sshll.u32 %s1289_s11, 4  ;;  %p1239_p8 = scmp.ne.s32.totalorder %s1478_s1, %s1238_s15  ;;  %s21_s12 = int_to_ptr.vmem [resolvable:$true] %s20_s12 }
  0x14   :  { %p1242_p9 = scmp.lt.u32.totalorder %s1238_s15, %s1478_s1 }
  0x16   :  { %p1244_p10 = pnand %p1242_p9, %p1239_p8 }
  0x18   :  { %1247 = shalt.err (!%p1244_p10)
}
  0x19   :  { %s1248_s20 = scalar_lea.vmem %s21_s12, 512  ;;  %p1253_p12 = scmp.lt.s32.totalorder %s21_s12, %s21_s12 }
  0x1a   :  { %p1249_p11 = scmp.ne.s32.totalorder %s21_s12, %s1248_s20  ;;  %p1254_p13 = scmp.lt.s32.totalorder %s1248_s20, %s1248_s20 }
  0x1c   :  { %p1255_p0 = por %p1254_p13, %p1253_p12 }
  0x1e   :  { %p1256_p1 = pnand %p1255_p0, %p1249_p11 }
  0x20   :  { %1259 = shalt.err (!%p1256_p1)
}
  0x21   :  { %s1290_s3 = smov 256   ;;  %s1291_s21 = smov 16  }
  0x22   :  { %26 = dma.hbm_to_vmem [thread:$0]  %s1478_s1, 512, %s21_s12, [#allocation3], %s1290_s3, %s1290_s3, %s1291_s21  }
  0x23   :  { %s1292_s24 = smov [#allocation6]   ;;  %s1260_s28 = scalar_lea.hbm %s1482_s5, 128 }
  0x24   :  { %s49_s25 = sshll.u32 %s1292_s24, 4  ;;  %p1261_p2 = scmp.ne.s32.totalorder %s1482_s5, %s1260_s28  ;;  %s50_s25 = int_to_ptr.vmem [resolvable:$true] %s49_s25 }
  0x25   :  { %p1264_p3 = scmp.lt.u32.totalorder %s1260_s28, %s1482_s5 }
  0x27   :  { %p1266_p4 = pnand %p1264_p3, %p1261_p2 }
  0x29   :  { %1269 = shalt.err (!%p1266_p4)
}
  0x2a   :  { %s1270_s9 = scalar_lea.vmem %s50_s25, 128  ;;  %p1275_p6 = scmp.lt.s32.totalorder %s50_s25, %s50_s25 }
  0x2b   :  { %p1271_p5 = scmp.ne.s32.totalorder %s50_s25, %s1270_s9  ;;  %p1276_p7 = scmp.lt.s32.totalorder %s1270_s9, %s1270_s9 }
  0x2d   :  { %p1277_p8 = por %p1276_p7, %p1275_p6 }
  0x2f   :  { %p1278_p9 = pnand %p1277_p8, %p1271_p5 }
  0x31   :  { %1281 = shalt.err (!%p1278_p9)
}
  0x32   :  { %52 = dma.hbm_to_vmem [thread:$0]  %s1482_s5, 128, %s50_s25, [#allocation5]  }
  0x33   :  { %1282 = dma.done.wait [#allocation3], 512  }
  0x34   :  { %1283 = vsyncadd [#allocation3], 4294966784 }
  0x35   :  { %1284 = dma.done.wait [#allocation5], 16512  }
  0x36   :  { %1285 = vsyncadd [#allocation5], 4294950784  ;;  %v1293_v0 = vmov 0   ;;  %vm110_vm0 = vcmask 1044480   ;;  %v218_v4 = vld [vmem:[#allocation4 + $0x8] sm:$0xff]  ;;  %v220_v8 = vld [vmem:[#allocation4 + $0x18] sm:$0xff] }
  0x37   :  { %155 = vmatprep.mubr.bf16.mxu0 %v1293_v0  ;;  %196 = vmatprep.mubr.bf16.mxu1 %v1293_v0  ;;  %v1178_v1 = vld [vmem:[#allocation2 + $0x4] ss:$16 sps:$4 sm:$0x1f]   ;;  %v1180_v2 = vld [vmem:[#allocation2] ss:$16 sps:$4 sm:$0x1f]   ;;  %v346_v7 = vunpack.c.l.s8.bf16 %v218_v4  ;;  %v348_v11 = vunpack.c.l.s8.bf16 %v220_v8  ;;  %v354_v15 = vunpack.c.h.s8.bf16 %v218_v4  ;;  %v356_v18 = vunpack.c.h.s8.bf16 %v220_v8 }
  0x38   :  { %1149 = vmatprep.subr.msk.bf16.mxu0 %vm110_vm0, %v1178_v1  ;;  %v1181_v3 = vld [vmem:[#allocation2 + $0xc] ss:$16 sps:$4 sm:$0x1f]   ;;  %v112_v5 = vsel %vm110_vm0, %v1180_v2, 0  ;;  %v217_v9 = vld [vmem:[#allocation4] sm:$0xff]  ;;  %vm106_vm1 = vcmask 80896  }
  0x39   :  { %v1183_v6 = vld [vmem:[#allocation2 + $0x8] ss:$16 sps:$4 sm:$0x1f]   ;;  %124 = vmatpush1.bf16.msra.mxu0 %v112_v5  ;;  %v63_v10 = vld [vmem:[%s1477_s0] sm:$0x1]  ;;  %1151 = vmatprep.subr.msk.bf16.mxu1 %vm110_vm0, %v1181_v3  ;;  %v345_v12 = vunpack.c.l.s8.bf16 %v217_v9  ;;  %v353_v19 = vunpack.c.h.s8.bf16 %v217_v9  ;;  %v225_v22 = vld [vmem:[#allocation4 + $0x40] sm:$0xff] }
  0x3a   :  { %v219_v13 = vld [vmem:[#allocation4 + $0x10] sm:$0xff]  ;;  %v118_v14 = vsel %vm110_vm0, %v1183_v6, 0  ;;  %601 = vmatprep.subr.bf16.mxu0 %v346_v7  ;;  %v226_v17 = vld [vmem:[#allocation4 + $0x48] sm:$0xff]  ;;  %v228_v20 = vld [vmem:[#allocation4 + $0x58] sm:$0xff]  ;;  %v361_v26 = vunpack.c.l.s8.bf16 %v225_v22  ;;  %v369_v31 = vunpack.c.h.s8.bf16 %v225_v22 }
  0x3b   :  { %165 = vmatpush1.bf16.msra.mxu1 %v118_v14  ;;  %v347_v16 = vunpack.c.l.s8.bf16 %v219_v13  ;;  %v362_v21 = vunpack.c.l.s8.bf16 %v226_v17  ;;  %v355_v23 = vunpack.c.h.s8.bf16 %v219_v13  ;;  %v364_v24 = vunpack.c.l.s8.bf16 %v228_v20  ;;  %v227_v25 = vld [vmem:[#allocation4 + $0x50] sm:$0xff]  ;;  %v234_v29 = vld [vmem:[#allocation4 + $0x88] sm:$0xff]  ;;  %v236_v32 = vld [vmem:[#allocation4 + $0x98] sm:$0xff] }
  0x3c   :  { %1150 = vmatmul.mubr.msk.bf16.vlgmr.msra.gmra.mrb[0].mxu0 %vm106_vm1, %v63_v10  ;;  %683 = vmatprep.subr.bf16.mxu1 %v348_v11  ;;  %v370_v27 = vunpack.c.h.s8.bf16 %v226_v17  ;;  %v363_v28 = vunpack.c.l.s8.bf16 %v227_v25  ;;  %v372_v30 = vunpack.c.h.s8.bf16 %v228_v20  ;;  %v378_v33 = vunpack.c.l.s8.bf16 %v234_v29  ;;  %v233_v34 = vld [vmem:[#allocation4 + $0x80] sm:$0xff]  ;;  %v235_v37 = vld [vmem:[#allocation4 + $0x90] sm:$0xff]  ;;  %v242_v41 = vld [vmem:[#allocation4 + $0xc8] sm:$0xff] }
  0x3d   :  { %602 = vmatpush1.bf16.msra.mxu0 %v345_v12  ;;  %v371_v35 = vunpack.c.h.s8.bf16 %v227_v25  ;;  %v380_v36 = vunpack.c.l.s8.bf16 %v236_v32  ;;  %v377_v38 = vunpack.c.l.s8.bf16 %v233_v34  ;;  %v386_v39 = vunpack.c.h.s8.bf16 %v234_v29  ;;  %v244_v44 = vld [vmem:[#allocation4 + $0xd8] sm:$0xff]  ;;  %v241_v46 = vld [vmem:[#allocation4 + $0xc0] sm:$0xff]  ;;  %v243_v49 = vld [vmem:[#allocation4 + $0xd0] sm:$0xff] }
  0x3e   :  { %1152 = vmatmul.mubr.msk.bf16.vlgmr.msra.gmra.mrb[0].mxu1 %vm106_vm1, %v63_v10  ;;  %603 = vmatprep.subr.bf16.mxu0 %v354_v15  ;;  %v379_v40 = vunpack.c.l.s8.bf16 %v235_v37  ;;  %v388_v42 = vunpack.c.h.s8.bf16 %v236_v32  ;;  %v385_v43 = vunpack.c.h.s8.bf16 %v233_v34  ;;  %v394_v45 = vunpack.c.l.s8.bf16 %v242_v41  ;;  %v250_v53 = vld [vmem:[#allocation4 + $0x108] sm:$0xff]  ;;  %v252_v56 = vld [vmem:[#allocation4 + $0x118] sm:$0xff]  ;;  %v249_v58 = vld [vmem:[#allocation4 + $0x100] sm:$0xff] }
  0x3f   :  { %684 = vmatpush1.bf16.msra.mxu1 %v347_v16  ;;  %v387_v47 = vunpack.c.h.s8.bf16 %v235_v37  ;;  %v396_v48 = vunpack.c.l.s8.bf16 %v244_v44  ;;  %v393_v50 = vunpack.c.l.s8.bf16 %v241_v46  ;;  %v402_v51 = vunpack.c.h.s8.bf16 %v242_v41  ;;  %v251_v61 = vld [vmem:[#allocation4 + $0x110] sm:$0xff]  ;;  %v258_v1 = vld [vmem:[#allocation4 + $0x148] sm:$0xff]  ;;  %v260_v4 = vld [vmem:[#allocation4 + $0x158] sm:$0xff] }
  0x40   :  { %685 = vmatprep.subr.bf16.mxu1 %v356_v18  ;;  %v395_v52 = vunpack.c.l.s8.bf16 %v243_v49  ;;  %v404_v54 = vunpack.c.h.s8.bf16 %v244_v44  ;;  %v401_v55 = vunpack.c.h.s8.bf16 %v241_v46  ;;  %v410_v57 = vunpack.c.l.s8.bf16 %v250_v53  ;;  %v257_v6 = vld [vmem:[#allocation4 + $0x140] sm:$0xff]  ;;  %v259_v9 = vld [vmem:[#allocation4 + $0x150] sm:$0xff]  ;;  %v266_v13 = vld [vmem:[#allocation4 + $0x188] sm:$0xff] }
  0x41   :  { %604 = vmatpush1.bf16.msra.mxu0 %v353_v19  ;;  %v403_v59 = vunpack.c.h.s8.bf16 %v243_v49  ;;  %v412_v60 = vunpack.c.l.s8.bf16 %v252_v56  ;;  %v409_v62 = vunpack.c.l.s8.bf16 %v249_v58  ;;  %v418_v63 = vunpack.c.h.s8.bf16 %v250_v53  ;;  %v268_v16 = vld [vmem:[#allocation4 + $0x198] sm:$0xff]  ;;  %v265_v18 = vld [vmem:[#allocation4 + $0x180] sm:$0xff] }
  0x42   :  { %605 = vmatprep.subr.bf16.mxu0 %v362_v21  ;;  %v411_v0 = vunpack.c.l.s8.bf16 %v251_v61  ;;  %v420_v2 = vunpack.c.h.s8.bf16 %v252_v56  ;;  %v417_v3 = vunpack.c.h.s8.bf16 %v249_v58  ;;  %v426_v5 = vunpack.c.l.s8.bf16 %v258_v1  ;;  %v267_v21 = vld [vmem:[#allocation4 + $0x190] sm:$0xff]  ;;  %v276_v29 = vld [vmem:[#allocation4 + $0x1d8] sm:$0xff]  ;;  %v273_v32 = vld [vmem:[#allocation4 + $0x1c0] sm:$0xff] }
  0x43   :  { %686 = vmatpush1.bf16.msra.mxu1 %v355_v23  ;;  %v419_v7 = vunpack.c.h.s8.bf16 %v251_v61  ;;  %v428_v8 = vunpack.c.l.s8.bf16 %v260_v4  ;;  %v425_v10 = vunpack.c.l.s8.bf16 %v257_v6  ;;  %v434_v11 = vunpack.c.h.s8.bf16 %v258_v1  ;;  %v284_v41 = vld [vmem:[#allocation4 + $0x218] sm:$0xff] }
  0x44   :  { %687 = vmatprep.subr.bf16.mxu1 %v364_v24  ;;  %v427_v12 = vunpack.c.l.s8.bf16 %v259_v9  ;;  %v436_v14 = vunpack.c.h.s8.bf16 %v260_v4  ;;  %v433_v15 = vunpack.c.h.s8.bf16 %v257_v6  ;;  %v442_v17 = vunpack.c.l.s8.bf16 %v266_v13 }
  0x45   :  { %606 = vmatpush1.bf16.msra.mxu0 %v361_v26  ;;  %v435_v19 = vunpack.c.h.s8.bf16 %v259_v9  ;;  %v444_v20 = vunpack.c.l.s8.bf16 %v268_v16  ;;  %v441_v22 = vunpack.c.l.s8.bf16 %v265_v18  ;;  %v450_v23 = vunpack.c.h.s8.bf16 %v266_v13 }
  0x46   :  { %607 = vmatprep.subr.bf16.mxu0 %v370_v27  ;;  %v443_v24 = vunpack.c.l.s8.bf16 %v267_v21  ;;  %v452_v25 = vunpack.c.h.s8.bf16 %v268_v16  ;;  %v449_v26 = vunpack.c.h.s8.bf16 %v265_v18  ;;  %v451_v27 = vunpack.c.h.s8.bf16 %v267_v21  ;;  %v289_v21 = vld [vmem:[#allocation4 + $0x240] sm:$0xff] }
  0x47   :  { %688 = vmatpush1.bf16.msra.mxu1 %v363_v28  ;;  %v274_v28 = vld [vmem:[#allocation4 + $0x1c8] sm:$0xff]  ;;  %v457_v34 = vunpack.c.l.s8.bf16 %v273_v32  ;;  %v468_v37 = vunpack.c.h.s8.bf16 %v276_v29  ;;  %v70_v44 = vlaneseq  ;;  %v484_v13 = vunpack.c.h.s8.bf16 %v284_v41 }
  0x48   :  { %689 = vmatprep.subr.bf16.mxu1 %v372_v30  ;;  %v458_v30 = vunpack.c.l.s8.bf16 %v274_v28 }
  0x49   :  { %608 = vmatpush1.bf16.msra.mxu0 %v369_v31  ;;  %v460_v31 = vunpack.c.l.s8.bf16 %v276_v29  ;;  %v497_v29 = vunpack.c.h.s8.bf16 %v289_v21 }
  0x4a   :  { %609 = vmatprep.subr.bf16.mxu0 %v378_v33  ;;  %v275_v33 = vld [vmem:[#allocation4 + $0x1d0] sm:$0xff] }
  0x4b   :  { %690 = vmatpush1.bf16.msra.mxu1 %v371_v35  ;;  %v459_v35 = vunpack.c.l.s8.bf16 %v275_v33 }
  0x4c   :  { %691 = vmatprep.subr.bf16.mxu1 %v380_v36  ;;  %v466_v36 = vunpack.c.h.s8.bf16 %v274_v28  ;;  %v300_v28 = vld [vmem:[#allocation4 + $0x298] sm:$0xff] }
  0x4d   :  { %610 = vmatpush1.bf16.msra.mxu0 %v377_v38  ;;  %v465_v38 = vunpack.c.h.s8.bf16 %v273_v32  ;;  %v508_v32 = vunpack.c.l.s8.bf16 %v300_v28 }
  0x4e   :  { %611 = vmatprep.subr.bf16.mxu0 %v386_v39  ;;  %v467_v39 = vunpack.c.h.s8.bf16 %v275_v33  ;;  %v297_v33 = vld [vmem:[#allocation4 + $0x280] sm:$0xff] }
  0x4f   :  { %692 = vmatpush1.bf16.msra.mxu1 %v379_v40  ;;  %v282_v40 = vld [vmem:[#allocation4 + $0x208] sm:$0xff] }
  0x50   :  { %693 = vmatprep.subr.bf16.mxu1 %v388_v42  ;;  %v474_v42 = vunpack.c.l.s8.bf16 %v282_v40 }
  0x51   :  { %612 = vmatpush1.bf16.msra.mxu0 %v385_v43  ;;  %v476_v43 = vunpack.c.l.s8.bf16 %v284_v41  ;;  %v513_v41 = vunpack.c.h.s8.bf16 %v297_v33 }
  0x52   :  { %613 = vmatprep.subr.bf16.mxu0 %v394_v45  ;;  %v1375_v45 = vshrl.u32 %v70_v44, 7 }
  0x53   :  { %694 = vmatpush1.bf16.msra.mxu1 %v387_v47  ;;  %v1383_v47 = vld [vmem:[%s1479_s2] sm:$0xf] }
  0x54   :  { %695 = vmatprep.subr.bf16.mxu1 %v396_v48  ;;  %v1378_v46 = vsub.s32 0, %v1375_v45  ;;  %v1386_v48 = vsub.s32 1, %v1375_v45  ;;  %v1389_v49 = vsub.s32 3, %v1375_v45 }
  0x55   :  { %614 = vmatpush1.bf16.msra.mxu0 %v393_v50 }
  0x56   :  { %615 = vmatprep.subr.bf16.mxu0 %v402_v51  ;;  %v73_v50 = vrot.slane %v1383_v47, %v1378_v46  ;;  %v77_v51 = vrot.slane %v1383_v47, %v1386_v48  ;;  %v85_v53 = vrot.slane %v1383_v47, %v1389_v49 }
  0x57   :  { %696 = vmatpush1.bf16.msra.mxu1 %v395_v52 }
  0x58   :  { %697 = vmatprep.subr.bf16.mxu1 %v404_v54 }
  0x59   :  { %616 = vmatpush1.bf16.msra.mxu0 %v401_v55 }
  0x5a   :  { %617 = vmatprep.subr.bf16.mxu0 %v410_v57 }
  0x5b   :  { %698 = vmatpush1.bf16.msra.mxu1 %v403_v59 }
  0x5c   :  { %699 = vmatprep.subr.bf16.mxu1 %v412_v60 }
  0x5d   :  { %618 = vmatpush1.bf16.msra.mxu0 %v409_v62 }
  0x5e   :  { %619 = vmatprep.subr.bf16.mxu0 %v418_v63 }
  0x5f   :  { %700 = vmatpush1.bf16.msra.mxu1 %v411_v0 }
  0x60   :  { %701 = vmatprep.subr.bf16.mxu1 %v420_v2  ;;  %v281_v2 = vld [vmem:[#allocation4 + $0x200] sm:$0xff] }
  0x61   :  { %620 = vmatpush1.bf16.msra.mxu0 %v417_v3  ;;  %v283_v3 = vld [vmem:[#allocation4 + $0x210] sm:$0xff] }
  0x62   :  { %621 = vmatprep.subr.bf16.mxu0 %v426_v5  ;;  %v475_v9 = vunpack.c.l.s8.bf16 %v283_v3  ;;  %v483_v18 = vunpack.c.h.s8.bf16 %v283_v3 }
  0x63   :  { %702 = vmatpush1.bf16.msra.mxu1 %v419_v7 }
  0x64   :  { %703 = vmatprep.subr.bf16.mxu1 %v428_v8  ;;  %v473_v8 = vunpack.c.l.s8.bf16 %v281_v2 }
  0x65   :  { %622 = vmatpush1.bf16.msra.mxu0 %v425_v10 }
  0x66   :  { %623 = vmatprep.subr.bf16.mxu0 %v434_v11 }
  0x67   :  { %704 = vmatpush1.bf16.msra.mxu1 %v427_v12  ;;  %v482_v12 = vunpack.c.h.s8.bf16 %v282_v40  ;;  %v308_v40 = vld [vmem:[#allocation4 + $0x2d8] sm:$0xff] }
  0x68   :  { %705 = vmatprep.subr.bf16.mxu1 %v436_v14  ;;  %v290_v14 = vld [vmem:[#allocation4 + $0x248] sm:$0xff]  ;;  %v524_v44 = vunpack.c.l.s8.bf16 %v308_v40 }
  0x69   :  { %624 = vmatpush1.bf16.msra.mxu0 %v433_v15  ;;  %v292_v15 = vld [vmem:[#allocation4 + $0x258] sm:$0xff] }
  0x6a   :  { %625 = vmatprep.subr.bf16.mxu0 %v442_v17  ;;  %v481_v17 = vunpack.c.h.s8.bf16 %v281_v2 }
  0x6b   :  { %706 = vmatpush1.bf16.msra.mxu1 %v435_v19  ;;  %v490_v19 = vunpack.c.l.s8.bf16 %v290_v14 }
  0x6c   :  { %707 = vmatprep.subr.bf16.mxu1 %v444_v20  ;;  %v492_v20 = vunpack.c.l.s8.bf16 %v292_v15 }
  0x6d   :  { %626 = vmatpush1.bf16.msra.mxu0 %v441_v22  ;;  %v291_v22 = vld [vmem:[#allocation4 + $0x250] sm:$0xff] }
  0x6e   :  { %627 = vmatprep.subr.bf16.mxu0 %v450_v23  ;;  %v489_v23 = vunpack.c.l.s8.bf16 %v289_v21  ;;  %v332_v21 = vld [vmem:[#allocation4 + $0x398] sm:$0xff] }
  0x6f   :  { %708 = vmatpush1.bf16.msra.mxu1 %v443_v24  ;;  %v491_v24 = vunpack.c.l.s8.bf16 %v291_v22 }
  0x70   :  { %709 = vmatprep.subr.bf16.mxu1 %v452_v25  ;;  %v498_v25 = vunpack.c.h.s8.bf16 %v290_v14  ;;  %v323_v14 = vld [vmem:[#allocation4 + $0x350] sm:$0xff] }
  0x71   :  { %628 = vmatpush1.bf16.msra.mxu0 %v449_v26  ;;  %v500_v26 = vunpack.c.h.s8.bf16 %v292_v15 }
  0x72   :  { %629 = vmatprep.subr.bf16.mxu0 %v458_v30  ;;  %v499_v30 = vunpack.c.h.s8.bf16 %v291_v22 }
  0x73   :  { %710 = vmatpush1.bf16.msra.mxu1 %v451_v27  ;;  %v298_v27 = vld [vmem:[#allocation4 + $0x288] sm:$0xff] }
  0x74   :  { %711 = vmatprep.subr.bf16.mxu1 %v460_v31  ;;  %v506_v31 = vunpack.c.l.s8.bf16 %v298_v27 }
  0x75   :  { %630 = vmatpush1.bf16.msra.mxu0 %v457_v34  ;;  %v299_v34 = vld [vmem:[#allocation4 + $0x290] sm:$0xff] }
  0x76   :  { %631 = vmatprep.subr.bf16.mxu0 %v466_v36  ;;  %v507_v36 = vunpack.c.l.s8.bf16 %v299_v34 }
  0x77   :  { %712 = vmatpush1.bf16.msra.mxu1 %v459_v35  ;;  %v505_v35 = vunpack.c.l.s8.bf16 %v297_v33  ;;  %v580_v33 = vunpack.c.h.s8.bf16 %v332_v21 }
  0x78   :  { %713 = vmatprep.subr.bf16.mxu1 %v468_v37  ;;  %v514_v37 = vunpack.c.h.s8.bf16 %v298_v27  ;;  %v331_v27 = vld [vmem:[#allocation4 + $0x390] sm:$0xff] }
  0x79   :  { %632 = vmatpush1.bf16.msra.mxu0 %v465_v38  ;;  %v516_v38 = vunpack.c.h.s8.bf16 %v300_v28  ;;  %v1412_v28 = vsub.s32 2, %v1375_v45 }
  0x7a   :  { %642 = vmatprep.subr.bf16.mxu0 %v474_v42  ;;  %v515_v42 = vunpack.c.h.s8.bf16 %v299_v34  ;;  %v338_v34 = vld [vmem:[#allocation4 + $0x3c8] sm:$0xff] }
  0x7b   :  { %714 = vmatpush1.bf16.msra.mxu1 %v467_v39  ;;  %v306_v39 = vld [vmem:[#allocation4 + $0x2c8] sm:$0xff] }
  0x7c   :  { %724 = vmatprep.subr.bf16.mxu1 %v476_v43  ;;  %v522_v43 = vunpack.c.l.s8.bf16 %v306_v39 }
 0x10f   :  { %v157_v52 = vpop.f32.mrb[0].mxu0 }
 0x110   :  { %v158_v54 = vadd.f32 %v157_v52, %v73_v50  ;;  %v159_v55 = vpop.f32.mrb[1].mxu0  ;;  %v305_v50 = vld [vmem:[#allocation4 + $0x2c0] sm:$0xff] }
 0x111   :  { %v160_v56 = vadd.f32 %v159_v55, %v77_v51  ;;  %v161_v57 = vpop.f32.mrb[2].mxu0  ;;  %v1397_v58 = vpop.f32.mrb[0].mxu1  ;;  %v307_v51 = vld [vmem:[#allocation4 + $0x2d0] sm:$0xff]  ;;  %v521_v52 = vunpack.c.l.s8.bf16 %v305_v50  ;;  %v532_v55 = vunpack.c.h.s8.bf16 %v308_v40 }
 0x112   :  { %v205_v59 = vmul.f32 0.01, %v158_v54  ;;  %v162_v60 = vpop.f32.mrb[3].mxu0  ;;  %v200_v61 = vpop.f32.mrb[1].mxu1  ;;  %v316_v57 = vld [vmem:[#allocation4 + $0x318] sm:$0xff] }
 0x113   :  { %v206_v62 = vmul.f32 0.01, %v160_v56  ;;  %v201_v63 = vadd.f32 %v200_v61, %v85_v53  ;;  %v202_v0 = vpop.f32.mrb[2].mxu1  ;;  %v523_v53 = vunpack.c.l.s8.bf16 %v307_v51  ;;  %v531_v60 = vunpack.c.h.s8.bf16 %v307_v51 }
 0x114   :  { %v209_v1 = vmax.f32 %v158_v54, %v205_v59  ;;  %v203_v4 = vpop.f32.mrb[3].mxu1  ;;  %v530_v54 = vunpack.c.h.s8.bf16 %v306_v39  ;;  %v529_v59 = vunpack.c.h.s8.bf16 %v305_v50  ;;  %v315_v0 = vld [vmem:[#allocation4 + $0x310] sm:$0xff]  ;;  %v586_v39 = vunpack.c.l.s8.bf16 %v338_v34 }
 0x115   :  { %v210_v5 = vmax.f32 %v160_v56, %v206_v62  ;;  %v208_v6 = vmul.f32 0.01, %v201_v63  ;;  %v314_v56 = vld [vmem:[#allocation4 + $0x308] sm:$0xff]  ;;  %v540_v62 = vunpack.c.l.s8.bf16 %v316_v57  ;;  %v539_v2 = vunpack.c.l.s8.bf16 %v315_v0 }
 0x116   :  { %v1401_v11 = vpack.c.bf16 %v209_v1, %v209_v1  ;;  %v538_v61 = vunpack.c.l.s8.bf16 %v314_v56  ;;  %v546_v3 = vunpack.c.h.s8.bf16 %v314_v56  ;;  %v548_v4 = vunpack.c.h.s8.bf16 %v316_v57 }
 0x117   :  { %v1399_v7 = vpack.c.bf16 %v210_v5, %v210_v5  ;;  %v212_v10 = vmax.f32 %v201_v63, %v208_v6  ;;  %v313_v63 = vld [vmem:[#allocation4 + $0x300] sm:$0xff]  ;;  %v322_v5 = vld [vmem:[#allocation4 + $0x348] sm:$0xff]  ;;  %v324_v6 = vld [vmem:[#allocation4 + $0x358] sm:$0xff]  ;;  %v594_v50 = vunpack.c.h.s8.bf16 %v338_v34 }
 0x118   :  { %v537_v1 = vunpack.c.l.s8.bf16 %v313_v63  ;;  %v245_v34 = vld [vmem:[#allocation4 + $0xe0] sm:$0xff] }
 0x119   :  { %633 = vmatprep.mubr.bf16.mxu0 %v1399_v7  ;;  %715 = vmatprep.mubr.bf16.mxu1 %v1399_v7  ;;  %v1405_v16 = vpack.c.bf16 %v212_v10, %v212_v10  ;;  %v554_v10 = vunpack.c.l.s8.bf16 %v322_v5 }
 0x11a   :  { %634 = vmatmul.mubr.bf16.vlgmr.msra.gmra.mrb[4].mxu0 %v1401_v11  ;;  %716 = vmatmul.mubr.bf16.vlgmr.msra.gmra.mrb[4].mxu1 %v1401_v11 }
 0x11b   :  { %643 = vmatpush1.bf16.msra.mxu0 %v473_v8  ;;  %725 = vmatpush1.bf16.msra.mxu1 %v475_v9  ;;  %v545_v8 = vunpack.c.h.s8.bf16 %v313_v63  ;;  %v547_v9 = vunpack.c.h.s8.bf16 %v315_v0 }
 0x11c   :  { %644 = vmatprep.subr.bf16.mxu0 %v482_v12  ;;  %726 = vmatprep.subr.bf16.mxu1 %v484_v13  ;;  %v556_v12 = vunpack.c.l.s8.bf16 %v324_v6  ;;  %v321_v13 = vld [vmem:[#allocation4 + $0x340] sm:$0xff] }
 0x11d   :  { %674 = vmatprep.mubr.bf16.mxu0 %v1405_v16  ;;  %756 = vmatprep.mubr.bf16.mxu1 %v1405_v16  ;;  %v553_v15 = vunpack.c.l.s8.bf16 %v321_v13  ;;  %v561_v22 = vunpack.c.h.s8.bf16 %v321_v13 }
 0x11f   :  { %645 = vmatpush1.bf16.msra.mxu0 %v481_v17  ;;  %727 = vmatpush1.bf16.msra.mxu1 %v483_v18  ;;  %v555_v17 = vunpack.c.l.s8.bf16 %v323_v14  ;;  %v562_v18 = vunpack.c.h.s8.bf16 %v322_v5 }
 0x120   :  { %646 = vmatprep.subr.bf16.mxu0 %v490_v19  ;;  %728 = vmatprep.subr.bf16.mxu1 %v492_v20  ;;  %v564_v19 = vunpack.c.h.s8.bf16 %v324_v6  ;;  %v330_v20 = vld [vmem:[#allocation4 + $0x388] sm:$0xff] }
 0x123   :  { %647 = vmatpush1.bf16.msra.mxu0 %v489_v23  ;;  %729 = vmatpush1.bf16.msra.mxu1 %v491_v24  ;;  %v563_v23 = vunpack.c.h.s8.bf16 %v323_v14  ;;  %v570_v24 = vunpack.c.l.s8.bf16 %v330_v20 }
 0x124   :  { %648 = vmatprep.subr.bf16.mxu0 %v498_v25  ;;  %730 = vmatprep.subr.bf16.mxu1 %v500_v26  ;;  %v572_v25 = vunpack.c.l.s8.bf16 %v332_v21  ;;  %v329_v26 = vld [vmem:[#allocation4 + $0x380] sm:$0xff] }
 0x125   :  { %v237_v21 = vld [vmem:[#allocation4 + $0xa0] sm:$0xff] }
 0x127   :  { %649 = vmatpush1.bf16.msra.mxu0 %v497_v29  ;;  %731 = vmatpush1.bf16.msra.mxu1 %v499_v30  ;;  %v569_v29 = vunpack.c.l.s8.bf16 %v329_v26  ;;  %v571_v30 = vunpack.c.l.s8.bf16 %v331_v27 }
 0x128   :  { %650 = vmatprep.subr.bf16.mxu0 %v506_v31  ;;  %732 = vmatprep.subr.bf16.mxu1 %v508_v32  ;;  %v81_v31 = vrot.slane %v1383_v47, %v1412_v28  ;;  %v578_v32 = vunpack.c.h.s8.bf16 %v330_v20 }
 0x12b   :  { %651 = vmatpush1.bf16.msra.mxu0 %v505_v35  ;;  %733 = vmatpush1.bf16.msra.mxu1 %v507_v36  ;;  %v340_v35 = vld [vmem:[#allocation4 + $0x3d8] sm:$0xff]  ;;  %v577_v36 = vunpack.c.h.s8.bf16 %v329_v26 }
 0x12c   :  { %652 = vmatprep.subr.bf16.mxu0 %v514_v37  ;;  %734 = vmatprep.subr.bf16.mxu1 %v516_v38  ;;  %v579_v37 = vunpack.c.h.s8.bf16 %v331_v27  ;;  %v199_v38 = vadd.f32 %v1397_v58, %v81_v31  ;;  %v588_v40 = vunpack.c.l.s8.bf16 %v340_v35  ;;  %v596_v51 = vunpack.c.h.s8.bf16 %v340_v35 }
 0x12d   :  { %v389_v31 = vunpack.c.h.s8.bf16 %v237_v21 }
 0x12f   :  { %653 = vmatpush1.bf16.msra.mxu0 %v513_v41  ;;  %735 = vmatpush1.bf16.msra.mxu1 %v515_v42  ;;  %v337_v41 = vld [vmem:[#allocation4 + $0x3c0] sm:$0xff]  ;;  %v339_v42 = vld [vmem:[#allocation4 + $0x3d0] sm:$0xff] }
 0x130   :  { %654 = vmatprep.subr.bf16.mxu0 %v522_v43  ;;  %736 = vmatprep.subr.bf16.mxu1 %v524_v44  ;;  %v585_v43 = vunpack.c.l.s8.bf16 %v337_v41  ;;  %v587_v47 = vunpack.c.l.s8.bf16 %v339_v42  ;;  %v207_v44 = vmul.f32 0.01, %v199_v38  ;;  %v593_v58 = vunpack.c.h.s8.bf16 %v337_v41  ;;  %v254_v41 = vld [vmem:[#allocation4 + $0x128] sm:$0xff] }
 0x133   :  { %655 = vmatpush1.bf16.msra.mxu0 %v521_v52  ;;  %737 = vmatpush1.bf16.msra.mxu1 %v523_v53  ;;  %v222_v52 = vld [vmem:[#allocation4 + $0x28] sm:$0xff]  ;;  %v224_v53 = vld [vmem:[#allocation4 + $0x38] sm:$0xff] }
 0x134   :  { %656 = vmatprep.subr.bf16.mxu0 %v530_v54  ;;  %738 = vmatprep.subr.bf16.mxu1 %v532_v55  ;;  %v595_v54 = vunpack.c.h.s8.bf16 %v339_v42  ;;  %v211_v55 = vmax.f32 %v199_v38, %v207_v44  ;;  %v350_v56 = vunpack.c.l.s8.bf16 %v222_v52  ;;  %v352_v57 = vunpack.c.l.s8.bf16 %v224_v53  ;;  %v256_v42 = vld [vmem:[#allocation4 + $0x138] sm:$0xff] }
 0x135   :  { %v358_v0 = vunpack.c.h.s8.bf16 %v222_v52  ;;  %v414_v44 = vunpack.c.l.s8.bf16 %v254_v41  ;;  %v255_v52 = vld [vmem:[#allocation4 + $0x130] sm:$0xff] }
 0x137   :  { %657 = vmatpush1.bf16.msra.mxu0 %v529_v59  ;;  %739 = vmatpush1.bf16.msra.mxu1 %v531_v60  ;;  %v221_v59 = vld [vmem:[#allocation4 + $0x20] sm:$0xff]  ;;  %v223_v60 = vld [vmem:[#allocation4 + $0x30] sm:$0xff] }
 0x138   :  { %658 = vmatprep.subr.bf16.mxu0 %v538_v61  ;;  %740 = vmatprep.subr.bf16.mxu1 %v540_v62  ;;  %v349_v61 = vunpack.c.l.s8.bf16 %v221_v59  ;;  %v1417_v62 = vpack.c.bf16 %v211_v55, %v211_v55  ;;  %v351_v63 = vunpack.c.l.s8.bf16 %v223_v60  ;;  %v359_v5 = vunpack.c.h.s8.bf16 %v223_v60 }
 0x139   :  { %v424_v55 = vunpack.c.h.s8.bf16 %v256_v42  ;;  %v423_v60 = vunpack.c.h.s8.bf16 %v255_v52 }
 0x13b   :  { %659 = vmatpush1.bf16.msra.mxu0 %v537_v1  ;;  %741 = vmatpush1.bf16.msra.mxu1 %v539_v2  ;;  %v360_v1 = vunpack.c.h.s8.bf16 %v224_v53  ;;  %v230_v2 = vld [vmem:[#allocation4 + $0x68] sm:$0xff] }
 0x13c   :  { %660 = vmatprep.subr.bf16.mxu0 %v546_v3  ;;  %742 = vmatprep.subr.bf16.mxu1 %v548_v4  ;;  %v232_v3 = vld [vmem:[#allocation4 + $0x78] sm:$0xff]  ;;  %v357_v4 = vunpack.c.h.s8.bf16 %v221_v59  ;;  %v366_v6 = vunpack.c.l.s8.bf16 %v230_v2  ;;  %v374_v14 = vunpack.c.h.s8.bf16 %v230_v2 }
 0x13f   :  { %661 = vmatpush1.bf16.msra.mxu0 %v545_v8  ;;  %743 = vmatpush1.bf16.msra.mxu1 %v547_v9  ;;  %v229_v8 = vld [vmem:[#allocation4 + $0x60] sm:$0xff]  ;;  %v368_v9 = vunpack.c.l.s8.bf16 %v232_v3 }
 0x140   :  { %662 = vmatprep.subr.bf16.mxu0 %v554_v10  ;;  %744 = vmatprep.subr.bf16.mxu1 %v556_v12  ;;  %v231_v10 = vld [vmem:[#allocation4 + $0x70] sm:$0xff]  ;;  %v365_v12 = vunpack.c.l.s8.bf16 %v229_v8 }
 0x141   :  { %v367_v13 = vunpack.c.l.s8.bf16 %v231_v10 }
 0x143   :  { %663 = vmatpush1.bf16.msra.mxu0 %v553_v15  ;;  %745 = vmatpush1.bf16.msra.mxu1 %v555_v17  ;;  %v376_v15 = vunpack.c.h.s8.bf16 %v232_v3  ;;  %v238_v17 = vld [vmem:[#allocation4 + $0xa8] sm:$0xff] }
 0x144   :  { %664 = vmatprep.subr.bf16.mxu0 %v562_v18  ;;  %746 = vmatprep.subr.bf16.mxu1 %v564_v19  ;;  %v240_v18 = vld [vmem:[#allocation4 + $0xb8] sm:$0xff]  ;;  %v373_v19 = vunpack.c.h.s8.bf16 %v229_v8  ;;  %v382_v20 = vunpack.c.l.s8.bf16 %v238_v17  ;;  %v390_v26 = vunpack.c.h.s8.bf16 %v238_v17 }
 0x145   :  { %v392_v27 = vunpack.c.h.s8.bf16 %v240_v18  ;;  %v272_v8 = vld [vmem:[#allocation4 + $0x1b8] sm:$0xff] }
 0x147   :  { %665 = vmatpush1.bf16.msra.mxu0 %v561_v22  ;;  %747 = vmatpush1.bf16.msra.mxu1 %v563_v23  ;;  %v384_v22 = vunpack.c.l.s8.bf16 %v240_v18  ;;  %v239_v23 = vld [vmem:[#allocation4 + $0xb0] sm:$0xff] }
 0x148   :  { %666 = vmatprep.subr.bf16.mxu0 %v570_v24  ;;  %748 = vmatprep.subr.bf16.mxu1 %v572_v25  ;;  %v381_v24 = vunpack.c.l.s8.bf16 %v237_v21  ;;  %v383_v25 = vunpack.c.l.s8.bf16 %v239_v23  ;;  %v280_v21 = vld [vmem:[#allocation4 + $0x1f8] sm:$0xff] }
 0x14b   :  { %667 = vmatpush1.bf16.msra.mxu0 %v569_v29  ;;  %749 = vmatpush1.bf16.msra.mxu1 %v571_v30  ;;  %v246_v29 = vld [vmem:[#allocation4 + $0xe8] sm:$0xff]  ;;  %v248_v30 = vld [vmem:[#allocation4 + $0xf8] sm:$0xff] }
 0x14c   :  { %668 = vmatprep.subr.bf16.mxu0 %v578_v32  ;;  %750 = vmatprep.subr.bf16.mxu1 %v580_v33  ;;  %v391_v32 = vunpack.c.h.s8.bf16 %v239_v23  ;;  %v398_v33 = vunpack.c.l.s8.bf16 %v246_v29  ;;  %v400_v35 = vunpack.c.l.s8.bf16 %v248_v30 }
 0x14f   :  { %669 = vmatpush1.bf16.msra.mxu0 %v577_v36  ;;  %751 = vmatpush1.bf16.msra.mxu1 %v579_v37  ;;  %v247_v36 = vld [vmem:[#allocation4 + $0xf0] sm:$0xff]  ;;  %v397_v37 = vunpack.c.l.s8.bf16 %v245_v34 }
 0x150   :  { %670 = vmatprep.subr.bf16.mxu0 %v586_v39  ;;  %752 = vmatprep.subr.bf16.mxu1 %v588_v40  ;;  %v399_v38 = vunpack.c.l.s8.bf16 %v247_v36  ;;  %v406_v39 = vunpack.c.h.s8.bf16 %v246_v29  ;;  %v408_v40 = vunpack.c.h.s8.bf16 %v248_v30 }
 0x153   :  { %671 = vmatpush1.bf16.msra.mxu0 %v585_v43  ;;  %753 = vmatpush1.bf16.msra.mxu1 %v587_v47  ;;  %v405_v43 = vunpack.c.h.s8.bf16 %v245_v34  ;;  %v407_v47 = vunpack.c.h.s8.bf16 %v247_v36  ;;  %v288_v34 = vld [vmem:[#allocation4 + $0x238] sm:$0xff] }
 0x154   :  { %672 = vmatprep.subr.bf16.mxu0 %v594_v50  ;;  %754 = vmatprep.subr.bf16.mxu1 %v596_v51  ;;  %v253_v50 = vld [vmem:[#allocation4 + $0x120] sm:$0xff]  ;;  %v416_v51 = vunpack.c.l.s8.bf16 %v256_v42 }
 0x155   :  { %v413_v53 = vunpack.c.l.s8.bf16 %v253_v50  ;;  %v421_v59 = vunpack.c.h.s8.bf16 %v253_v50  ;;  %v296_v50 = vld [vmem:[#allocation4 + $0x278] sm:$0xff] }
 0x157   :  { %673 = vmatpush1.bf16.msra.mxu0 %v593_v58  ;;  %755 = vmatpush1.bf16.msra.mxu1 %v595_v54  ;;  %v415_v58 = vunpack.c.l.s8.bf16 %v255_v52  ;;  %v422_v54 = vunpack.c.h.s8.bf16 %v254_v41 }
 0x158   :  { %765 = vmatprep.subr.bf16.mxu0 %v350_v56  ;;  %847 = vmatprep.subr.bf16.mxu1 %v352_v57  ;;  %v262_v56 = vld [vmem:[#allocation4 + $0x168] sm:$0xff]  ;;  %v264_v57 = vld [vmem:[#allocation4 + $0x178] sm:$0xff] }
 0x15a   :  { %675 = vmatmul.mubr.bf16.vlgmr.msra.gmra.mrb[4].mxu0 %v1417_v62  ;;  %757 = vmatmul.mubr.bf16.vlgmr.msra.gmra.mrb[4].mxu1 %v1417_v62 }
 0x15b   :  { %766 = vmatpush1.bf16.msra.mxu0 %v349_v61  ;;  %797 = vmatprep.mubr.bf16.mxu0 %v1399_v7  ;;  %v430_v61 = vunpack.c.l.s8.bf16 %v262_v56 }
 0x15c   :  { %848 = vmatpush1.bf16.msra.mxu1 %v351_v63  ;;  %879 = vmatprep.mubr.bf16.mxu1 %v1399_v7  ;;  %v375_v7 = vunpack.c.h.s8.bf16 %v231_v10  ;;  %v261_v63 = vld [vmem:[#allocation4 + $0x160] sm:$0xff] }
 0x15d   :  { %767 = vmatprep.subr.bf16.mxu0 %v358_v0  ;;  %849 = vmatprep.subr.bf16.mxu1 %v360_v1  ;;  %v432_v0 = vunpack.c.l.s8.bf16 %v264_v57  ;;  %v263_v1 = vld [vmem:[#allocation4 + $0x170] sm:$0xff]  ;;  %v429_v2 = vunpack.c.l.s8.bf16 %v261_v63 }
 0x15e   :  { %v431_v3 = vunpack.c.l.s8.bf16 %v263_v1  ;;  %v439_v10 = vunpack.c.h.s8.bf16 %v263_v1  ;;  %v301_v1 = vld [vmem:[#allocation4 + $0x2a0] sm:$0xff] }
 0x15f   :  { %768 = vmatpush1.bf16.msra.mxu0 %v357_v4  ;;  %v438_v4 = vunpack.c.h.s8.bf16 %v262_v56 }
 0x160   :  { %850 = vmatpush1.bf16.msra.mxu1 %v359_v5  ;;  %769 = vmatprep.subr.bf16.mxu0 %v366_v6  ;;  %v440_v5 = vunpack.c.h.s8.bf16 %v264_v57  ;;  %v270_v6 = vld [vmem:[#allocation4 + $0x1a8] sm:$0xff] }
 0x161   :  { %851 = vmatprep.subr.bf16.mxu1 %v368_v9  ;;  %v437_v9 = vunpack.c.h.s8.bf16 %v261_v63 }
 0x163   :  { %770 = vmatpush1.bf16.msra.mxu0 %v365_v12  ;;  %v446_v12 = vunpack.c.l.s8.bf16 %v270_v6 }
 0x164   :  { %852 = vmatpush1.bf16.msra.mxu1 %v367_v13  ;;  %771 = vmatprep.subr.bf16.mxu0 %v374_v14  ;;  %v269_v13 = vld [vmem:[#allocation4 + $0x1a0] sm:$0xff]  ;;  %v448_v14 = vunpack.c.l.s8.bf16 %v272_v8 }
 0x165   :  { %853 = vmatprep.subr.bf16.mxu1 %v376_v15  ;;  %v271_v15 = vld [vmem:[#allocation4 + $0x1b0] sm:$0xff]  ;;  %v445_v17 = vunpack.c.l.s8.bf16 %v269_v13 }
 0x166   :  { %v447_v18 = vunpack.c.l.s8.bf16 %v271_v15  ;;  %v455_v23 = vunpack.c.h.s8.bf16 %v271_v15  ;;  %v309_v15 = vld [vmem:[#allocation4 + $0x2e0] sm:$0xff] }
 0x167   :  { %772 = vmatpush1.bf16.msra.mxu0 %v373_v19  ;;  %v454_v19 = vunpack.c.h.s8.bf16 %v270_v6 }
 0x168   :  { %854 = vmatpush1.bf16.msra.mxu1 %v375_v7  ;;  %773 = vmatprep.subr.bf16.mxu0 %v382_v20  ;;  %v456_v7 = vunpack.c.h.s8.bf16 %v272_v8  ;;  %v278_v20 = vld [vmem:[#allocation4 + $0x1e8] sm:$0xff] }
 0x169   :  { %855 = vmatprep.subr.bf16.mxu1 %v384_v22  ;;  %v453_v22 = vunpack.c.h.s8.bf16 %v269_v13 }
 0x16b   :  { %774 = vmatpush1.bf16.msra.mxu0 %v381_v24  ;;  %v462_v24 = vunpack.c.l.s8.bf16 %v278_v20 }
 0x16c   :  { %856 = vmatpush1.bf16.msra.mxu1 %v383_v25  ;;  %775 = vmatprep.subr.bf16.mxu0 %v390_v26  ;;  %v277_v25 = vld [vmem:[#allocation4 + $0x1e0] sm:$0xff]  ;;  %v464_v26 = vunpack.c.l.s8.bf16 %v280_v21 }
 0x16d   :  { %857 = vmatprep.subr.bf16.mxu1 %v392_v27  ;;  %v279_v27 = vld [vmem:[#allocation4 + $0x1f0] sm:$0xff]  ;;  %v461_v29 = vunpack.c.l.s8.bf16 %v277_v25 }
 0x16e   :  { %v463_v30 = vunpack.c.l.s8.bf16 %v279_v27  ;;  %v471_v36 = vunpack.c.h.s8.bf16 %v279_v27  ;;  %v317_v27 = vld [vmem:[#allocation4 + $0x320] sm:$0xff] }
 0x16f   :  { %776 = vmatpush1.bf16.msra.mxu0 %v389_v31  ;;  %v470_v31 = vunpack.c.h.s8.bf16 %v278_v20 }
 0x170   :  { %858 = vmatpush1.bf16.msra.mxu1 %v391_v32  ;;  %777 = vmatprep.subr.bf16.mxu0 %v398_v33  ;;  %v472_v32 = vunpack.c.h.s8.bf16 %v280_v21  ;;  %v286_v33 = vld [vmem:[#allocation4 + $0x228] sm:$0xff] }
 0x171   :  { %859 = vmatprep.subr.bf16.mxu1 %v400_v35  ;;  %v469_v35 = vunpack.c.h.s8.bf16 %v277_v25 }
 0x173   :  { %778 = vmatpush1.bf16.msra.mxu0 %v397_v37  ;;  %v478_v37 = vunpack.c.l.s8.bf16 %v286_v33 }
 0x174   :  { %860 = vmatpush1.bf16.msra.mxu1 %v399_v38  ;;  %779 = vmatprep.subr.bf16.mxu0 %v406_v39  ;;  %v285_v38 = vld [vmem:[#allocation4 + $0x220] sm:$0xff]  ;;  %v480_v39 = vunpack.c.l.s8.bf16 %v288_v34 }
 0x175   :  { %861 = vmatprep.subr.bf16.mxu1 %v408_v40  ;;  %v287_v40 = vld [vmem:[#allocation4 + $0x230] sm:$0xff]  ;;  %v477_v41 = vunpack.c.l.s8.bf16 %v285_v38 }
 0x176   :  { %v479_v42 = vunpack.c.l.s8.bf16 %v287_v40  ;;  %v487_v52 = vunpack.c.h.s8.bf16 %v287_v40  ;;  %v325_v40 = vld [vmem:[#allocation4 + $0x360] sm:$0xff] }
 0x177   :  { %780 = vmatpush1.bf16.msra.mxu0 %v405_v43  ;;  %v486_v43 = vunpack.c.h.s8.bf16 %v286_v33 }
 0x178   :  { %862 = vmatpush1.bf16.msra.mxu1 %v407_v47  ;;  %781 = vmatprep.subr.bf16.mxu0 %v414_v44  ;;  %v294_v47 = vld [vmem:[#allocation4 + $0x268] sm:$0xff]  ;;  %v488_v44 = vunpack.c.h.s8.bf16 %v288_v34 }
 0x179   :  { %863 = vmatprep.subr.bf16.mxu1 %v416_v51  ;;  %v485_v51 = vunpack.c.h.s8.bf16 %v285_v38 }
 0x17b   :  { %782 = vmatpush1.bf16.msra.mxu0 %v413_v53  ;;  %v494_v53 = vunpack.c.l.s8.bf16 %v294_v47 }
 0x17c   :  { %864 = vmatpush1.bf16.msra.mxu1 %v415_v58  ;;  %783 = vmatprep.subr.bf16.mxu0 %v422_v54  ;;  %v293_v58 = vld [vmem:[#allocation4 + $0x260] sm:$0xff]  ;;  %v496_v54 = vunpack.c.l.s8.bf16 %v296_v50 }
 0x17d   :  { %865 = vmatprep.subr.bf16.mxu1 %v424_v55  ;;  %v295_v55 = vld [vmem:[#allocation4 + $0x270] sm:$0xff]  ;;  %v493_v56 = vunpack.c.l.s8.bf16 %v293_v58  ;;  %v501_v63 = vunpack.c.h.s8.bf16 %v293_v58 }
 0x17e   :  { %v495_v57 = vunpack.c.l.s8.bf16 %v295_v55 }
 0x17f   :  { %784 = vmatpush1.bf16.msra.mxu0 %v421_v59  ;;  %v504_v59 = vunpack.c.h.s8.bf16 %v296_v50 }
 0x180   :  { %866 = vmatpush1.bf16.msra.mxu1 %v423_v60  ;;  %785 = vmatprep.subr.bf16.mxu0 %v430_v61  ;;  %v302_v60 = vld [vmem:[#allocation4 + $0x2a8] sm:$0xff]  ;;  %v304_v61 = vld [vmem:[#allocation4 + $0x2b8] sm:$0xff] }
 0x181   :  { %867 = vmatprep.subr.bf16.mxu1 %v432_v0  ;;  %v503_v0 = vunpack.c.h.s8.bf16 %v295_v55  ;;  %v518_v6 = vunpack.c.h.s8.bf16 %v302_v60  ;;  %v520_v8 = vunpack.c.h.s8.bf16 %v304_v61  ;;  %v333_v55 = vld [vmem:[#allocation4 + $0x3a0] sm:$0xff] }
 0x183   :  { %786 = vmatpush1.bf16.msra.mxu0 %v429_v2  ;;  %v512_v2 = vunpack.c.l.s8.bf16 %v304_v61 }
 0x184   :  { %868 = vmatpush1.bf16.msra.mxu1 %v431_v3  ;;  %787 = vmatprep.subr.bf16.mxu0 %v438_v4  ;;  %v303_v3 = vld [vmem:[#allocation4 + $0x2b0] sm:$0xff]  ;;  %v509_v4 = vunpack.c.l.s8.bf16 %v301_v1 }
 0x185   :  { %869 = vmatprep.subr.bf16.mxu1 %v440_v5  ;;  %v511_v5 = vunpack.c.l.s8.bf16 %v303_v3  ;;  %v519_v13 = vunpack.c.h.s8.bf16 %v303_v3  ;;  %v341_v3 = vld [vmem:[#allocation4 + $0x3e0] sm:$0xff] }
 0x187   :  { %788 = vmatpush1.bf16.msra.mxu0 %v437_v9  ;;  %v310_v9 = vld [vmem:[#allocation4 + $0x2e8] sm:$0xff] }
 0x188   :  { %870 = vmatpush1.bf16.msra.mxu1 %v439_v10  ;;  %789 = vmatprep.subr.bf16.mxu0 %v446_v12  ;;  %v312_v10 = vld [vmem:[#allocation4 + $0x2f8] sm:$0xff]  ;;  %v517_v12 = vunpack.c.h.s8.bf16 %v301_v1  ;;  %v534_v20 = vunpack.c.h.s8.bf16 %v310_v9 }
 0x189   :  { %871 = vmatprep.subr.bf16.mxu1 %v448_v14  ;;  %v526_v14 = vunpack.c.l.s8.bf16 %v310_v9  ;;  %v536_v21 = vunpack.c.h.s8.bf16 %v312_v10 }
 0x18b   :  { %790 = vmatpush1.bf16.msra.mxu0 %v445_v17  ;;  %v528_v17 = vunpack.c.l.s8.bf16 %v312_v10 }
 0x18c   :  { %872 = vmatpush1.bf16.msra.mxu1 %v447_v18  ;;  %791 = vmatprep.subr.bf16.mxu0 %v454_v19  ;;  %v311_v18 = vld [vmem:[#allocation4 + $0x2f0] sm:$0xff]  ;;  %v525_v19 = vunpack.c.l.s8.bf16 %v309_v15 }
 0x18d   :  { %873 = vmatprep.subr.bf16.mxu1 %v456_v7  ;;  %v527_v7 = vunpack.c.l.s8.bf16 %v311_v18  ;;  %v535_v25 = vunpack.c.h.s8.bf16 %v311_v18 }
 0x18f   :  { %792 = vmatpush1.bf16.msra.mxu0 %v453_v22  ;;  %v318_v22 = vld [vmem:[#allocation4 + $0x328] sm:$0xff] }
 0x190   :  { %874 = vmatpush1.bf16.msra.mxu1 %v455_v23  ;;  %793 = vmatprep.subr.bf16.mxu0 %v462_v24  ;;  %v320_v23 = vld [vmem:[#allocation4 + $0x338] sm:$0xff]  ;;  %v533_v24 = vunpack.c.h.s8.bf16 %v309_v15  ;;  %v550_v33 = vunpack.c.h.s8.bf16 %v318_v22  ;;  %v1434_v15 = vld [vmem:[#allocation6] sm:$0xff] }
 0x191   :  { %875 = vmatprep.subr.bf16.mxu1 %v464_v26  ;;  %v542_v26 = vunpack.c.l.s8.bf16 %v318_v22  ;;  %v552_v34 = vunpack.c.h.s8.bf16 %v320_v23 }
 0x193   :  { %794 = vmatpush1.bf16.msra.mxu0 %v461_v29  ;;  %v544_v29 = vunpack.c.l.s8.bf16 %v320_v23  ;;  %v988_v23 = vrot.slane %v1434_v15, %v1386_v48 }
 0x194   :  { %876 = vmatpush1.bf16.msra.mxu1 %v463_v30  ;;  %795 = vmatprep.subr.bf16.mxu0 %v470_v31  ;;  %v319_v30 = vld [vmem:[#allocation4 + $0x330] sm:$0xff]  ;;  %v541_v31 = vunpack.c.l.s8.bf16 %v317_v27 }
 0x195   :  { %877 = vmatprep.subr.bf16.mxu1 %v472_v32  ;;  %v543_v32 = vunpack.c.l.s8.bf16 %v319_v30  ;;  %v551_v38 = vunpack.c.h.s8.bf16 %v319_v30 }
 0x197   :  { %796 = vmatpush1.bf16.msra.mxu0 %v469_v35  ;;  %v326_v35 = vld [vmem:[#allocation4 + $0x368] sm:$0xff] }
 0x198   :  { %878 = vmatpush1.bf16.msra.mxu1 %v471_v36  ;;  %806 = vmatprep.subr.bf16.mxu0 %v478_v37  ;;  %v328_v36 = vld [vmem:[#allocation4 + $0x378] sm:$0xff]  ;;  %v549_v37 = vunpack.c.h.s8.bf16 %v317_v27 }
 0x199   :  { %888 = vmatprep.subr.bf16.mxu1 %v480_v39  ;;  %v558_v39 = vunpack.c.l.s8.bf16 %v326_v35  ;;  %v568_v50 = vunpack.c.h.s8.bf16 %v328_v36 }
 0x19a   :  { %798 = vmatmul.mubr.bf16.vlgmr.msra.gmra.mrb[8].mxu0 %v1401_v11 }
 0x19b   :  { %880 = vmatmul.mubr.bf16.vlgmr.msra.gmra.mrb[8].mxu1 %v1401_v11  ;;  %807 = vmatpush1.bf16.msra.mxu0 %v477_v41  ;;  %v502_v11 = vunpack.c.h.s8.bf16 %v294_v47  ;;  %v560_v41 = vunpack.c.l.s8.bf16 %v328_v36 }
 0x19c   :  { %838 = vmatprep.mubr.bf16.mxu0 %v1405_v16  ;;  %889 = vmatpush1.bf16.msra.mxu1 %v479_v42  ;;  %v327_v42 = vld [vmem:[#allocation4 + $0x370] sm:$0xff] }
 0x19d   :  { %920 = vmatprep.mubr.bf16.mxu1 %v1405_v16  ;;  %808 = vmatprep.subr.bf16.mxu0 %v486_v43  ;;  %v510_v16 = vunpack.c.l.s8.bf16 %v302_v60  ;;  %v557_v43 = vunpack.c.l.s8.bf16 %v325_v40  ;;  %v559_v47 = vunpack.c.l.s8.bf16 %v327_v42  ;;  %v567_v58 = vunpack.c.h.s8.bf16 %v327_v42 }
 0x19e   :  { %890 = vmatprep.subr.bf16.mxu1 %v488_v44  ;;  %v566_v44 = vunpack.c.h.s8.bf16 %v326_v35 }
 0x19f   :  { %809 = vmatpush1.bf16.msra.mxu0 %v485_v51  ;;  %v334_v51 = vld [vmem:[#allocation4 + $0x3a8] sm:$0xff] }
 0x1a0   :  { %891 = vmatpush1.bf16.msra.mxu1 %v487_v52  ;;  %810 = vmatprep.subr.bf16.mxu0 %v494_v53  ;;  %v336_v52 = vld [vmem:[#allocation4 + $0x3b8] sm:$0xff]  ;;  %v565_v53 = vunpack.c.h.s8.bf16 %v325_v40  ;;  %v582_v60 = vunpack.c.h.s8.bf16 %v334_v51 }
 0x1a1   :  { %892 = vmatprep.subr.bf16.mxu1 %v496_v54  ;;  %v574_v54 = vunpack.c.l.s8.bf16 %v334_v51  ;;  %v584_v61 = vunpack.c.h.s8.bf16 %v336_v52 }
 0x1a3   :  { %811 = vmatpush1.bf16.msra.mxu0 %v493_v56  ;;  %v576_v56 = vunpack.c.l.s8.bf16 %v336_v52 }
 0x1a4   :  { %893 = vmatpush1.bf16.msra.mxu1 %v495_v57  ;;  %812 = vmatprep.subr.bf16.mxu0 %v502_v11  ;;  %v335_v57 = vld [vmem:[#allocation4 + $0x3b0] sm:$0xff]  ;;  %v573_v11 = vunpack.c.l.s8.bf16 %v333_v55 }
 0x1a5   :  { %894 = vmatprep.subr.bf16.mxu1 %v504_v59  ;;  %v575_v59 = vunpack.c.l.s8.bf16 %v335_v57  ;;  %v583_v1 = vunpack.c.h.s8.bf16 %v335_v57 }
 0x1a7   :  { %813 = vmatpush1.bf16.msra.mxu0 %v501_v63  ;;  %v342_v63 = vld [vmem:[#allocation4 + $0x3e8] sm:$0xff] }
 0x1a8   :  { %895 = vmatpush1.bf16.msra.mxu1 %v503_v0  ;;  %814 = vmatprep.subr.bf16.mxu0 %v510_v16  ;;  %v344_v0 = vld [vmem:[#allocation4 + $0x3f8] sm:$0xff]  ;;  %v581_v16 = vunpack.c.h.s8.bf16 %v333_v55  ;;  %v598_v9 = vunpack.c.h.s8.bf16 %v342_v63 }
 0x1a9   :  { %896 = vmatprep.subr.bf16.mxu1 %v512_v2  ;;  %v590_v2 = vunpack.c.l.s8.bf16 %v342_v63  ;;  %v600_v10 = vunpack.c.h.s8.bf16 %v344_v0 }
 0x1ab   :  { %815 = vmatpush1.bf16.msra.mxu0 %v509_v4  ;;  %v592_v4 = vunpack.c.l.s8.bf16 %v344_v0 }
 0x1ac   :  { %897 = vmatpush1.bf16.msra.mxu1 %v511_v5  ;;  %816 = vmatprep.subr.bf16.mxu0 %v518_v6  ;;  %v343_v5 = vld [vmem:[#allocation4 + $0x3f0] sm:$0xff]  ;;  %v589_v6 = vunpack.c.l.s8.bf16 %v341_v3 }
 0x1ad   :  { %898 = vmatprep.subr.bf16.mxu1 %v520_v8  ;;  %v591_v8 = vunpack.c.l.s8.bf16 %v343_v5 }
 0x1af   :  { %817 = vmatpush1.bf16.msra.mxu0 %v517_v12  ;;  %v597_v12 = vunpack.c.h.s8.bf16 %v341_v3  ;;  %v1294_v3 = vmov 1983009808  }
 0x1b0   :  { %899 = vmatpush1.bf16.msra.mxu1 %v519_v13  ;;  %818 = vmatprep.subr.bf16.mxu0 %v526_v14  ;;  %v599_v13 = vunpack.c.h.s8.bf16 %v343_v5  ;;  %v1432_v14 = vld [vmem:[%s1481_s4] sm:$0xff] }
 0x1b1   :  { %900 = vmatprep.subr.bf16.mxu1 %v528_v17  ;;  %v934_v17 = vrot.slane %v1432_v14, %v1378_v46  ;;  %v942_v18 = vrot.slane %v1432_v14, %v1412_v28 }
 0x1b3   :  { %819 = vmatpush1.bf16.msra.mxu0 %v525_v19  ;;  %v938_v19 = vrot.slane %v1432_v14, %v1386_v48 }
 0x1b4   :  { %901 = vmatpush1.bf16.msra.mxu1 %v527_v7  ;;  %820 = vmatprep.subr.bf16.mxu0 %v534_v20  ;;  %v946_v7 = vrot.slane %v1432_v14, %v1389_v49  ;;  %v992_v20 = vrot.slane %v1434_v15, %v1412_v28 }
 0x1b5   :  { %902 = vmatprep.subr.bf16.mxu1 %v536_v21 }
 0x1b7   :  { %821 = vmatpush1.bf16.msra.mxu0 %v533_v24  ;;  %v996_v24 = vrot.slane %v1434_v15, %v1389_v49 }
 0x1b8   :  { %903 = vmatpush1.bf16.msra.mxu1 %v535_v25  ;;  %822 = vmatprep.subr.bf16.mxu0 %v542_v26 }
 0x1b9   :  { %904 = vmatprep.subr.bf16.mxu1 %v544_v29 }
 0x1bb   :  { %823 = vmatpush1.bf16.msra.mxu0 %v541_v31 }
 0x1bc   :  { %905 = vmatpush1.bf16.msra.mxu1 %v543_v32  ;;  %824 = vmatprep.subr.bf16.mxu0 %v550_v33 }
 0x1bd   :  { %906 = vmatprep.subr.bf16.mxu1 %v552_v34 }
 0x1bf   :  { %825 = vmatpush1.bf16.msra.mxu0 %v549_v37 }
 0x1c0   :  { %907 = vmatpush1.bf16.msra.mxu1 %v551_v38  ;;  %826 = vmatprep.subr.bf16.mxu0 %v558_v39 }
 0x1c1   :  { %908 = vmatprep.subr.bf16.mxu1 %v560_v41 }
 0x1c3   :  { %827 = vmatpush1.bf16.msra.mxu0 %v557_v43 }
 0x1c4   :  { %909 = vmatpush1.bf16.msra.mxu1 %v559_v47  ;;  %828 = vmatprep.subr.bf16.mxu0 %v566_v44 }
 0x1c5   :  { %910 = vmatprep.subr.bf16.mxu1 %v568_v50 }
 0x1c7   :  { %829 = vmatpush1.bf16.msra.mxu0 %v565_v53 }
 0x1c8   :  { %911 = vmatpush1.bf16.msra.mxu1 %v567_v58  ;;  %830 = vmatprep.subr.bf16.mxu0 %v574_v54 }
 0x1c9   :  { %912 = vmatprep.subr.bf16.mxu1 %v576_v56 }
 0x1cb   :  { %831 = vmatpush1.bf16.msra.mxu0 %v573_v11 }
 0x1cc   :  { %913 = vmatpush1.bf16.msra.mxu1 %v575_v59  ;;  %832 = vmatprep.subr.bf16.mxu0 %v582_v60 }
 0x1cd   :  { %914 = vmatprep.subr.bf16.mxu1 %v584_v61 }
 0x1cf   :  { %833 = vmatpush1.bf16.msra.mxu0 %v581_v16 }
 0x1d0   :  { %915 = vmatpush1.bf16.msra.mxu1 %v583_v1  ;;  %834 = vmatprep.subr.bf16.mxu0 %v590_v2 }
 0x1d1   :  { %916 = vmatprep.subr.bf16.mxu1 %v592_v4  ;;  %v1104_v4 = vunpack.c.l.s4 %v1294_v3 }
 0x1d3   :  { %835 = vmatpush1.bf16.msra.mxu0 %v589_v6  ;;  %v1105_v5 = vunpack.c.0.s8 %v1104_v4 }
 0x1d4   :  { %917 = vmatpush1.bf16.msra.mxu1 %v591_v8  ;;  %836 = vmatprep.subr.bf16.mxu0 %v598_v9 }
 0x1d5   :  { %918 = vmatprep.subr.bf16.mxu1 %v600_v10  ;;  %v1453_v9 = vsub.s32 %v1105_v5, %v1375_v45 }
 0x1d7   :  { %837 = vmatpush1.bf16.msra.mxu0 %v597_v12 }
 0x1d8   :  { %919 = vmatpush1.bf16.msra.mxu1 %v599_v13 }
 0x1da   :  { %839 = vmatmul.mubr.bf16.vlgmr.msra.gmra.mrb[8].mxu0 %v1417_v62 }
 0x1db   :  { %921 = vmatmul.mubr.bf16.vlgmr.msra.gmra.mrb[8].mxu1 %v1417_v62  ;;  %v984_v62 = vrot.slane %v1434_v15, %v1378_v46 }
 0x22d   :  { %v676_v21 = vpop.f32.mrb[4].mxu0  ;;  %v758_v22 = vpop.f32.mrb[4].mxu1 }
 0x22e   :  { %v971_v25 = vmul.f32 %v934_v17, %v676_v21  ;;  %v973_v26 = vmul.f32 %v942_v18, %v758_v22  ;;  %v678_v27 = vpop.f32.mrb[5].mxu0  ;;  %v760_v29 = vpop.f32.mrb[5].mxu1  ;;  %v953_v21 = vsub.s32 5, %v1375_v45  ;;  %v961_v22 = vsub.s32 7, %v1375_v45 }
 0x22f   :  { %v972_v30 = vmul.f32 %v938_v19, %v678_v27  ;;  %v974_v31 = vmul.f32 %v946_v7, %v760_v29  ;;  %v680_v32 = vpop.f32.mrb[6].mxu0  ;;  %v762_v33 = vpop.f32.mrb[6].mxu1 }
 0x230   :  { %v1021_v46 = vadd.f32 %v984_v62, %v971_v25  ;;  %v1023_v34 = vadd.f32 %v992_v20, %v973_v26  ;;  %v681_v35 = vpop.f32.mrb[7].mxu0  ;;  %v763_v28 = vpop.f32.mrb[7].mxu1  ;;  %v949_v62 = vsub.s32 4, %v1375_v45  ;;  %v957_v20 = vsub.s32 6, %v1375_v45 }
 0x231   :  { %v1022_v36 = vadd.f32 %v988_v23, %v972_v30  ;;  %v1024_v37 = vadd.f32 %v996_v24, %v974_v31  ;;  %v954_v25 = vrot.slane %v1432_v14, %v953_v21  ;;  %v962_v27 = vrot.slane %v1432_v14, %v961_v22 }
 0x232   :  { %v1029_v38 = vmul.f32 0.01, %v1021_v46  ;;  %v1031_v39 = vmul.f32 0.01, %v1023_v34  ;;  %v950_v23 = vrot.slane %v1432_v14, %v949_v62  ;;  %v958_v24 = vrot.slane %v1432_v14, %v957_v20 }
 0x233   :  { %v1030_v48 = vmul.f32 0.01, %v1022_v36  ;;  %v1032_v40 = vmul.f32 0.01, %v1024_v37  ;;  %v1000_v26 = vrot.slane %v1434_v15, %v949_v62  ;;  %v1008_v30 = vrot.slane %v1434_v15, %v957_v20 }
 0x234   :  { %v1037_v41 = vmax.f32 %v1021_v46, %v1029_v38  ;;  %v1039_v49 = vmax.f32 %v1023_v34, %v1031_v39  ;;  %v1004_v31 = vrot.slane %v1434_v15, %v953_v21  ;;  %v1012_v45 = vrot.slane %v1434_v15, %v961_v22 }
 0x235   :  { %v1038_v42 = vmax.f32 %v1022_v36, %v1030_v48  ;;  %v1040_v43 = vmax.f32 %v1024_v37, %v1032_v40 }
 0x236   :  { %v1045_v47 = vmax.f32 %v1037_v41, -30.0  ;;  %v1047_v44 = vmax.f32 %v1039_v49, -30.0 }
 0x237   :  { %v1046_v50 = vmax.f32 %v1038_v42, -30.0  ;;  %v1048_v51 = vmax.f32 %v1040_v43, -30.0 }
 0x238   :  { %v1053_v52 = vsub.f32 0.0, %v1045_v47  ;;  %v1055_v53 = vsub.f32 0.0, %v1047_v44 }
 0x239   :  { %v1054_v58 = vsub.f32 0.0, %v1046_v50  ;;  %v1056_v54 = vsub.f32 0.0, %v1048_v51 }
 0x23a   :  { %v1061_v55 = vmul.f32 1.442695, %v1053_v52  ;;  %v1065_v56 = vmul.f32 1.442695, %v1055_v53 }
 0x23b   :  { %v1063_v57 = vmul.f32 1.442695, %v1054_v58  ;;  %v1067_v11 = vmul.f32 1.442695, %v1056_v54 }
 0x23c   :  { %1184 = vpow2.f32 %v1061_v55 }
 0x23d   :  { %1186 = vpow2.f32 %v1065_v56 }
 0x23e   :  { %1188 = vpow2.f32 %v1063_v57 }
 0x23f   :  { %1190 = vpow2.f32 %v1067_v11 }
 0x246   :  { %v1185_v59 = vpop.eup %1184 }
 0x247   :  { %v1187_v60 = vpop.eup %1186  ;;  %v1077_v61 = vadd.f32 1.0, %v1185_v59 }
 0x248   :  { %v1189_v63 = vpop.eup %1188  ;;  %v1079_v0 = vadd.f32 1.0, %v1187_v60 }
 0x249   :  { %v1191_v16 = vpop.eup %1190  ;;  %1192 = vrcp.f32 %v1077_v61  ;;  %v1078_v1 = vadd.f32 1.0, %v1189_v63 }
 0x24a   :  { %1194 = vrcp.f32 %v1079_v0  ;;  %v1080_v2 = vadd.f32 1.0, %v1191_v16 }
 0x24b   :  { %1196 = vrcp.f32 %v1078_v1 }
 0x24c   :  { %1198 = vrcp.f32 %v1080_v2 }
 0x253   :  { %v1193_v6 = vpop.eup %1192 }
 0x254   :  { %v1195_v8 = vpop.eup %1194 }
 0x255   :  { %v1197_v10 = vpop.eup %1196 }
 0x256   :  { %v1199_v12 = vpop.eup %1198  ;;  %v1101_v13 = vcombine.low %v1193_v6, %v1197_v10 }
 0x257   :  { %v1102_v17 = vcombine.low %v1195_v8, %v1199_v12 }
 0x258   :  { %v1109_v18 = vrot.slane %v1101_v13, %v1453_v9 }
 0x259   :  { %v1116_v19 = vrot.slane %v1102_v17, %v1453_v9 }
 0x25b   :  { %v1117_v7 = vcombine.low %v1109_v18, %v1116_v19 }
 0x25d   :  { %1137 = vst [vmem:[%s1483_s6] sm:$0xff] %v1117_v7 }
 0x2ad   :  { %v840_v29 = vpop.f32.mrb[8].mxu0 }
 0x2ae   :  { %v975_v32 = vmul.f32 %v950_v23, %v840_v29  ;;  %v922_v33 = vpop.f32.mrb[8].mxu1  ;;  %v842_v46 = vpop.f32.mrb[9].mxu0 }
 0x2af   :  { %v977_v34 = vmul.f32 %v958_v24, %v922_v33  ;;  %v976_v35 = vmul.f32 %v954_v25, %v842_v46  ;;  %v924_v28 = vpop.f32.mrb[9].mxu1  ;;  %v844_v36 = vpop.f32.mrb[10].mxu0 }
 0x2b0   :  { %v1025_v37 = vadd.f32 %v1000_v26, %v975_v32  ;;  %v978_v38 = vmul.f32 %v962_v27, %v924_v28  ;;  %v926_v39 = vpop.f32.mrb[10].mxu1  ;;  %v845_v48 = vpop.f32.mrb[11].mxu0 }
 0x2b1   :  { %v1027_v40 = vadd.f32 %v1008_v30, %v977_v34  ;;  %v1026_v14 = vadd.f32 %v1004_v31, %v976_v35  ;;  %v927_v41 = vpop.f32.mrb[11].mxu1 }
 0x2b2   :  { %v1033_v49 = vmul.f32 0.01, %v1025_v37  ;;  %v1028_v42 = vadd.f32 %v1012_v45, %v978_v38 }
 0x2b3   :  { %v1035_v43 = vmul.f32 0.01, %v1027_v40  ;;  %v1034_v47 = vmul.f32 0.01, %v1026_v14 }
 0x2b4   :  { %v1041_v44 = vmax.f32 %v1025_v37, %v1033_v49  ;;  %v1036_v50 = vmul.f32 0.01, %v1028_v42 }
 0x2b5   :  { %v1043_v51 = vmax.f32 %v1027_v40, %v1035_v43  ;;  %v1042_v52 = vmax.f32 %v1026_v14, %v1034_v47 }
 0x2b6   :  { %v1049_v15 = vmax.f32 %v1041_v44, -30.0  ;;  %v1044_v53 = vmax.f32 %v1028_v42, %v1036_v50 }
 0x2b7   :  { %v1051_v58 = vmax.f32 %v1043_v51, -30.0  ;;  %v1050_v54 = vmax.f32 %v1042_v52, -30.0 }
 0x2b8   :  { %v1057_v55 = vsub.f32 0.0, %v1049_v15  ;;  %v1052_v56 = vmax.f32 %v1044_v53, -30.0 }
 0x2b9   :  { %v1059_v57 = vsub.f32 0.0, %v1051_v58  ;;  %v1058_v11 = vsub.f32 0.0, %v1050_v54 }
 0x2ba   :  { %v1069_v59 = vmul.f32 1.442695, %v1057_v55  ;;  %v1060_v60 = vsub.f32 0.0, %v1052_v56 }
 0x2bb   :  { %v1073_v61 = vmul.f32 1.442695, %v1059_v57  ;;  %v1071_v63 = vmul.f32 1.442695, %v1058_v11 }
 0x2bc   :  { %1200 = vpow2.f32 %v1069_v59  ;;  %v1075_v0 = vmul.f32 1.442695, %v1060_v60 }
 0x2bd   :  { %1202 = vpow2.f32 %v1073_v61 }
 0x2be   :  { %1204 = vpow2.f32 %v1071_v63 }
 0x2bf   :  { %1206 = vpow2.f32 %v1075_v0 }
 0x2c6   :  { %v1201_v16 = vpop.eup %1200 }
 0x2c7   :  { %v1203_v1 = vpop.eup %1202  ;;  %v1081_v2 = vadd.f32 1.0, %v1201_v16 }
 0x2c8   :  { %v1205_v3 = vpop.eup %1204  ;;  %v1083_v4 = vadd.f32 1.0, %v1203_v1 }
 0x2c9   :  { %v1207_v5 = vpop.eup %1206  ;;  %1208 = vrcp.f32 %v1081_v2  ;;  %v1082_v6 = vadd.f32 1.0, %v1205_v3 }
 0x2ca   :  { %1210 = vrcp.f32 %v1083_v4  ;;  %v1084_v8 = vadd.f32 1.0, %v1207_v5 }
 0x2cb   :  { %1212 = vrcp.f32 %v1082_v6 }
 0x2cc   :  { %1214 = vrcp.f32 %v1084_v8 }
 0x2d3   :  { %v1209_v10 = vpop.eup %1208 }
 0x2d4   :  { %v1211_v12 = vpop.eup %1210 }
 0x2d5   :  { %v1213_v13 = vpop.eup %1212 }
 0x2d6   :  { %v1215_v17 = vpop.eup %1214  ;;  %v1118_v18 = vcombine.low %v1209_v10, %v1213_v13 }
 0x2d7   :  { %v1119_v19 = vcombine.low %v1211_v12, %v1215_v17 }
 0x2d8   :  { %v1126_v7 = vrot.slane %v1118_v18, %v1453_v9 }
 0x2d9   :  { %v1133_v62 = vrot.slane %v1119_v19, %v1453_v9 }
 0x2db   :  { %v1134_v20 = vcombine.low %v1126_v7, %v1133_v62 }
 0x2dd   :  { %1138 = vst [vmem:[%s1483_s6 + $0x8] sm:$0xff] %v1134_v20 }
 0x2de   :  { %1143 = vsyncpa [#allocation3], 1 }
 0x2df   :  { %1144 = vsyncpa [#allocation5], 1 }

</bundles_post_ra>
